<compile_context>
chip_gen: v6e
topology: v6e:2x2x1
jax: 0.10.0
libtpu: 0.0.40
codegen_flags: <defaults>
</compile_context>

<pallas_src>
import jax
import jax.numpy as jnp
from jax.experimental import pallas as pl
from jax.experimental.pallas import tpu as pltpu

# ---- problem sizes (small, deterministic) -----------------------------------
N = 256          # number of query points
F = 32           # sub-module input feature dim (x[:, 3:])
H = 32           # sub-module hidden dim
O = 4            # sub-module output dim (e.g. rgb + sigma)
C = 4            # number of centroids / sub-modules
DB = C * H       # width of the replicated distance block (= hidden width)
BOUNDARY_MARGIN = 2.0
EPS = 1e-8       # reference adds 1e-8 to the distance
EPS2 = EPS * EPS # squared-space equivalent for rsqrt(d2 + eps2)


def meganerf_kernel(x_ref, wcomb_ref, bcomb_ref, w2s_ref, b2r_ref, o_ref):
    x = x_ref[...]                                       # [tn, 3+F] f32

    # |xyz|^2 per row without slicing x (masked square + lane reduce, VPU/XLU).
    col = jax.lax.broadcasted_iota(jnp.int32, x.shape, 1)
    x2 = jnp.sum(jnp.where(col < 3, x * x, 0.0), axis=1, keepdims=True)  # [tn,1]

    # One fused MXU pass: [tn, 3+F] @ [3+F, 2*C*H].
    #   cols [0, C*H)  : c^2 - 2*xyz.c  (cluster c replicated H times)
    #   cols [C*H, ... ): pre-activation hidden state of every sub-MLP
    comb = (jnp.dot(x, wcomb_ref[...], preferred_element_type=jnp.float32)
            + bcomb_ref[...])                            # [tn, 2*DB]

    d2 = jnp.maximum(comb[:, :DB] + x2, 0.0)             # [tn, DB] squared dists
    h = jnp.maximum(comb[:, DB:], 0.0)                   # [tn, DB] ReLU hidden

    # Inverse-distance cluster weights, computed entirely in squared space.
    min_d2 = jnp.min(d2, axis=1, keepdims=True)
    inv = jax.lax.rsqrt(d2 + EPS2)                       # EUP, one pass
    inv = jnp.where(d2 > (BOUNDARY_MARGIN * BOUNDARY_MARGIN) * min_d2, 0.0, inv)
    # Exact normalization (lane-dense replicated weights = weights[:, c] / H).
    w_exp = inv / jnp.sum(inv, axis=1, keepdims=True)    # [tn, DB]

    # Weighted blend: (w/H * h) @ (H*W2_stacked) + (w/H) @ b2_repeated.
    hw = w_exp * h                                       # VPU
    out = (jnp.dot(hw, w2s_ref[...], preferred_element_type=jnp.float32)
           + jnp.dot(w_exp, b2r_ref[...], preferred_element_type=jnp.float32))

    o_ref[...] = out.astype(o_ref.dtype)                 # [tn, O]


def mega_nerf_forward(x, centroids, w1, b1, w2, b2, *, tn=None):
    """x: [N, 3+F] f32; centroids: [C, 3]; per-cluster MLP params stacked on C.

    tn: rows per grid step.  Defaults to the full N (single step).  For large
    N shrink it (v7x: grid >= 2 so both TensorCores get work; keep tn <= ~4K
    rows for v5e's 16 MiB default scoped VMEM / v7x's 64 MiB physical VMEM).
    """
    n = x.shape[0]
    tn = n if tn is None else tn
    assert n % tn == 0

    # ---- wrapper-side weight plumbing (tiny constant arrays, trace-time) ----
    # Fused rhs: [3+F, 2*C*H].  Distance block replicates each centroid H
    # times so the resulting per-column weights line up lane-for-lane with the
    # hidden state (no indicator matmul / lane-slice blend needed).
    cent_rep = jnp.repeat(centroids, H, axis=0)                    # [C*H, 3]
    c2_rep = jnp.repeat(jnp.sum(centroids * centroids, axis=1), H)  # [C*H]
    w1f = jnp.transpose(w1, (1, 0, 2)).reshape(F, C * H)           # [F, C*H]

    wcomb = jnp.zeros((3 + F, 2 * DB), jnp.float32)
    wcomb = wcomb.at[:3, :DB].set(-2.0 * jnp.transpose(cent_rep))  # -2 * c^T
    wcomb = wcomb.at[3:, DB:].set(w1f)
    bcomb = jnp.concatenate([c2_rep, b1.reshape(C * H)])[None, :]  # [1, 2*DB]

    # Second layer: W2 stacked vertically, prescaled by H (weights carry 1/H),
    # and b2 repeated per hidden lane (the j-sum restores the factor H).
    w2s = (jnp.float32(H) * w2).reshape(C * H, O)                  # [C*H, O]
    b2r = jnp.repeat(b2, H, axis=0)                                # [C*H, O]

    grid = (n // tn,)
    return pl.pallas_call(
        meganerf_kernel,
        out_shape=jax.ShapeDtypeStruct((n, O), jnp.float32),
        grid_spec=pltpu.PrefetchScalarGridSpec(
            num_scalar_prefetch=0,
            grid=grid,
            in_specs=[
                pl.BlockSpec((tn, 3 + F), lambda i: (i, 0)),       # x tile (whole)
                pl.BlockSpec((3 + F, 2 * DB), lambda i: (0, 0)),   # fused rhs
                pl.BlockSpec((1, 2 * DB), lambda i: (0, 0)),       # fused bias row
                pl.BlockSpec((C * H, O), lambda i: (0, 0)),        # H * W2 stacked
                pl.BlockSpec((C * H, O), lambda i: (0, 0)),        # b2 repeated
            ],
            out_specs=pl.BlockSpec((tn, O), lambda i: (i, 0)),
        ),
        compiler_params=pltpu.CompilerParams(
            dimension_semantics=("parallel",)),
    )(x, wcomb, bcomb, w2s, b2r)


def reference_forward(x, centroids, w1, b1, w2, b2):
    """Pure-JAX mirror of the PyTorch forward (xyz_real=True, sigma_only=False)."""
    d = jnp.sqrt(jnp.sum((x[:, None, :3] - centroids[None, :, :]) ** 2, axis=-1))
    inv = 1.0 / (d + EPS)
    min_d = jnp.min(d, axis=1, keepdims=True)
    inv = jnp.where(d > BOUNDARY_MARGIN * min_d, 0.0, inv)
    w = inv / jnp.sum(inv, axis=1, keepdims=True)
    feat = x[:, 3:]
    out = jnp.zeros((x.shape[0], O), jnp.float32)
    for i in range(C):
        h = jax.nn.relu(feat @ w1[i] + b1[i])
        out = out + (h @ w2[i] + b2[i]) * w[:, i:i + 1]
    return out


if __name__ == "__main__":
    key = jax.random.PRNGKey(0)
    kx, kc, k1, k2, k3, k4 = jax.random.split(key, 6)

    x = jax.random.normal(kx, (N, 3 + F), dtype=jnp.float32)
    centroids = jax.random.normal(kc, (C, 3), dtype=jnp.float32) * 2.0
    w1 = jax.random.normal(k1, (C, F, H), dtype=jnp.float32) * 0.1
    b1 = jax.random.normal(k2, (C, H), dtype=jnp.float32) * 0.01
    w2 = jax.random.normal(k3, (C, H, O), dtype=jnp.float32) * 0.1
    b2 = jax.random.normal(k4, (C, O), dtype=jnp.float32) * 0.01

    out = mega_nerf_forward(x, centroids, w1, b1, w2, b2)
    out = jax.block_until_ready(out)

    ref = reference_forward(x, centroids, w1, b1, w2, b2)
    assert out.shape == (N, O)
    assert jnp.all(jnp.isfinite(out))
    # Tolerance covers the quadratic-form cdist (vs exact-difference reference)
    # and rsqrt-in-squared-space epsilon semantics; normalization is exact.
    assert jnp.allclose(out, ref, atol=2e-3, rtol=2e-3), "mismatch vs reference"

    print("KERNEL_OK")
</pallas_src>

<mosaic_0001>
module attributes {stable_mosaic.version = 11 : i64} {
  func.func @meganerf_kernel(%arg0: i32, %arg1: memref<256x35xf32, #tpu.memory_space<vmem>>, %arg2: memref<35x256xf32, #tpu.memory_space<vmem>>, %arg3: memref<1x256xf32, #tpu.memory_space<vmem>>, %arg4: memref<128x4xf32, #tpu.memory_space<vmem>>, %arg5: memref<128x4xf32, #tpu.memory_space<vmem>>, %arg6: memref<256x4xf32, #tpu.memory_space<vmem>>) attributes {dimension_semantics = [#tpu.dimension_semantics<parallel>], iteration_bounds = array<i64: 1>, scalar_prefetch = 0 : i64, scratch_operands = 0 : i64, tpu.core_type = #tpu.core_type<tc>, window_params = [{transform_indices = @transform_0, window_bounds = array<i64: 256, 35>}, {pipeline_mode = #tpu.pipeline_mode<synchronous>, transform_indices = @transform_1, window_bounds = array<i64: 35, 256>}, {pipeline_mode = #tpu.pipeline_mode<synchronous>, transform_indices = @transform_2, window_bounds = array<i64: 1, 256>}, {pipeline_mode = #tpu.pipeline_mode<synchronous>, transform_indices = @transform_3, window_bounds = array<i64: 128, 4>}, {pipeline_mode = #tpu.pipeline_mode<synchronous>, transform_indices = @transform_4, window_bounds = array<i64: 128, 4>}, {transform_indices = @transform_5, window_bounds = array<i64: 256, 4>}]} {
    %c0 = arith.constant 0 : index
    %c0_0 = arith.constant 0 : index
    %0 = vector.load %arg1[%c0, %c0_0] : memref<256x35xf32, #tpu.memory_space<vmem>>, vector<256x35xf32>
    %1 = tpu.iota {dimensions = array<i32: 1>} : vector<256x35xi32>
    %c3_i32 = arith.constant 3 : i32
    %2 = vector.broadcast %c3_i32 : i32 to vector<256x35xi32>
    %3 = arith.cmpi slt, %1, %2 : vector<256x35xi32>
    %4 = arith.mulf %0, %0 : vector<256x35xf32>
    %cst = arith.constant 0.000000e+00 : f32
    %5 = vector.broadcast %cst : f32 to vector<256x35xf32>
    %6 = arith.select %3, %4, %5 : vector<256x35xi1>, vector<256x35xf32>
    %cst_1 = arith.constant dense<0.000000e+00> : vector<256xf32>
    %7 = vector.multi_reduction <add>, %6, %cst_1 [1] : vector<256x35xf32> to vector<256xf32>
    %8 = vector.shape_cast %7 : vector<256xf32> to vector<256x1xf32>
    %c0_2 = arith.constant 0 : index
    %c0_3 = arith.constant 0 : index
    %9 = vector.load %arg2[%c0_2, %c0_3] : memref<35x256xf32, #tpu.memory_space<vmem>>, vector<35x256xf32>
    %cst_4 = arith.constant dense<0.000000e+00> : vector<256x256xf32>
    %10 = tpu.matmul %0, %9, %cst_4 {dimension_numbers = #tpu.dot_dimension_numbers<[1], [0], [0], [1], [0, 0, 1, 1], [], []>} : vector<256x35xf32>, vector<35x256xf32>, vector<256x256xf32> -> vector<256x256xf32>
    %c0_5 = arith.constant 0 : index
    %c0_6 = arith.constant 0 : index
    %11 = vector.load %arg3[%c0_5, %c0_6] : memref<1x256xf32, #tpu.memory_space<vmem>>, vector<1x256xf32>
    %12 = vector.broadcast %11 : vector<1x256xf32> to vector<256x256xf32>
    %13 = arith.addf %10, %12 : vector<256x256xf32>
    %14 = vector.extract_strided_slice %13 {offsets = [0, 0], sizes = [256, 128], strides = [1, 1]} : vector<256x256xf32> to vector<256x128xf32>
    %15 = vector.broadcast %8 : vector<256x1xf32> to vector<256x128xf32>
    %16 = arith.addf %14, %15 : vector<256x128xf32>
    %cst_7 = arith.constant 0.000000e+00 : f32
    %17 = vector.broadcast %cst_7 : f32 to vector<256x128xf32>
    %18 = arith.maximumf %16, %17 : vector<256x128xf32>
    %19 = vector.extract_strided_slice %13 {offsets = [0, 128], sizes = [256, 128], strides = [1, 1]} : vector<256x256xf32> to vector<256x128xf32>
    %cst_8 = arith.constant 0.000000e+00 : f32
    %20 = vector.broadcast %cst_8 : f32 to vector<256x128xf32>
    %21 = arith.maximumf %19, %20 : vector<256x128xf32>
    %cst_9 = arith.constant dense<0x7F800000> : vector<256xf32>
    %22 = vector.multi_reduction <minimumf>, %18, %cst_9 [1] : vector<256x128xf32> to vector<256xf32>
    %23 = vector.shape_cast %22 : vector<256xf32> to vector<256x1xf32>
    %cst_10 = arith.constant 1.000000e-16 : f32
    %24 = vector.broadcast %cst_10 : f32 to vector<256x128xf32>
    %25 = arith.addf %18, %24 : vector<256x128xf32>
    %26 = math.rsqrt %25 : vector<256x128xf32>
    %cst_11 = arith.constant 4.000000e+00 : f32
    %27 = vector.broadcast %cst_11 : f32 to vector<256x1xf32>
    %28 = arith.mulf %27, %23 : vector<256x1xf32>
    %29 = vector.broadcast %28 : vector<256x1xf32> to vector<256x128xf32>
    %30 = arith.cmpf ogt, %18, %29 : vector<256x128xf32>
    %cst_12 = arith.constant 0.000000e+00 : f32
    %31 = vector.broadcast %cst_12 : f32 to vector<256x128xf32>
    %32 = arith.select %30, %31, %26 : vector<256x128xi1>, vector<256x128xf32>
    %cst_13 = arith.constant dense<0.000000e+00> : vector<256xf32>
    %33 = vector.multi_reduction <add>, %32, %cst_13 [1] : vector<256x128xf32> to vector<256xf32>
    %34 = vector.shape_cast %33 : vector<256xf32> to vector<256x1xf32>
    %35 = vector.broadcast %34 : vector<256x1xf32> to vector<256x128xf32>
    %36 = arith.divf %32, %35 : vector<256x128xf32>
    %37 = arith.mulf %36, %21 : vector<256x128xf32>
    %c0_14 = arith.constant 0 : index
    %c0_15 = arith.constant 0 : index
    %38 = vector.load %arg4[%c0_14, %c0_15] : memref<128x4xf32, #tpu.memory_space<vmem>>, vector<128x4xf32>
    %cst_16 = arith.constant dense<0.000000e+00> : vector<256x4xf32>
    %39 = tpu.matmul %37, %38, %cst_16 {dimension_numbers = #tpu.dot_dimension_numbers<[1], [0], [0], [1], [0, 0, 1, 1], [], []>} : vector<256x128xf32>, vector<128x4xf32>, vector<256x4xf32> -> vector<256x4xf32>
    %c0_17 = arith.constant 0 : index
    %c0_18 = arith.constant 0 : index
    %40 = vector.load %arg5[%c0_17, %c0_18] : memref<128x4xf32, #tpu.memory_space<vmem>>, vector<128x4xf32>
    %cst_19 = arith.constant dense<0.000000e+00> : vector<256x4xf32>
    %41 = tpu.matmul %36, %40, %cst_19 {dimension_numbers = #tpu.dot_dimension_numbers<[1], [0], [0], [1], [0, 0, 1, 1], [], []>} : vector<256x128xf32>, vector<128x4xf32>, vector<256x4xf32> -> vector<256x4xf32>
    %42 = arith.addf %39, %41 : vector<256x4xf32>
    %c0_20 = arith.constant 0 : index
    %c0_21 = arith.constant 0 : index
    %43 = vector.load %arg6[%c0_20, %c0_21] : memref<256x4xf32, #tpu.memory_space<vmem>>, vector<256x4xf32>
    tpu.vector_store %arg6[%c0_20, %c0_21], %42 {strides = array<i32>} : memref<256x4xf32, #tpu.memory_space<vmem>>, vector<256x4xf32>,
    return
  }
  func.func @transform_0(%arg0: i32) -> (i32, i32) {
    %c0_i32 = arith.constant 0 : i32
    %c0_i32_0 = arith.constant 0 : i32
    return %arg0, %c0_i32 : i32, i32
  }
  func.func @transform_1(%arg0: i32) -> (i32, i32) {
    %c0_i32 = arith.constant 0 : i32
    %c0_i32_0 = arith.constant 0 : i32
    %c0_i32_1 = arith.constant 0 : i32
    return %c0_i32, %c0_i32_0 : i32, i32
  }
  func.func @transform_2(%arg0: i32) -> (i32, i32) {
    %c0_i32 = arith.constant 0 : i32
    %c0_i32_0 = arith.constant 0 : i32
    %c0_i32_1 = arith.constant 0 : i32
    return %c0_i32, %c0_i32_0 : i32, i32
  }
  func.func @transform_3(%arg0: i32) -> (i32, i32) {
    %c0_i32 = arith.constant 0 : i32
    %c0_i32_0 = arith.constant 0 : i32
    %c0_i32_1 = arith.constant 0 : i32
    return %c0_i32, %c0_i32_0 : i32, i32
  }
  func.func @transform_4(%arg0: i32) -> (i32, i32) {
    %c0_i32 = arith.constant 0 : i32
    %c0_i32_0 = arith.constant 0 : i32
    %c0_i32_1 = arith.constant 0 : i32
    return %c0_i32, %c0_i32_0 : i32, i32
  }
  func.func @transform_5(%arg0: i32) -> (i32, i32) {
    %c0_i32 = arith.constant 0 : i32
    %c0_i32_0 = arith.constant 0 : i32
    return %arg0, %c0_i32 : i32, i32
  }
}

</mosaic_0001>

<bundles_post_ra>
// kernel: tpu_custom_call.1
= control target key start
LH: loop header
LB: loop body
LE: loop exit
PB: predicated region body
PF: predicated region fallthrough
CT: control target
= control target key end

     0   :  { %vm334_vm0 = vcmask 1042432   ;;  %v52_v0 = vlaneseq  ;;  %v2048_v4 = vmov 0.0   ;;  %vm119_vm2 = vcmask 285696   ;;  %s3363_s1 = inlined_call_operand.vmem [shape: f32[35,256], index: 1, kind: input, shape index: {}]   ;;  %s3364_s0 = inlined_call_operand.vmem [shape: f32[256,35], index: 0, kind: input, shape index: {}]   ;;  %s3365_s2 = inlined_call_operand.vmem [shape: f32[1,256], index: 2, kind: input, shape index: {}]   ;;  %s3366_s4 = inlined_call_operand.vmem [shape: f32[128,4], index: 4, kind: input, shape index: {}]   ;;  %s3367_s3 = inlined_call_operand.vmem [shape: f32[128,4], index: 3, kind: input, shape index: {}]   ;;  %s3368_s5 = inlined_call_operand.vmem [shape: f32[256,4], index: 5, kind: output, shape index: {}]  }
   0x1   :  { %v225_v1 = vld [vmem:[%s3363_s1 + $0x48] sm:$0x7]  ;;  %v224_v2 = vld [vmem:[%s3363_s1 + $0x40] sm:$0x7]  ;;  %v223_v3 = vld [vmem:[%s3363_s1 + $0x38] sm:$0xff]  ;;  %405 = vmatprep.mubr.f32.mxu0 %v2048_v4 }
   0x2   :  { %1597 = vmatprep.subr.msk.mxu0 %vm334_vm0, %v225_v1  ;;  %v222_v5 = vld [vmem:[%s3363_s1 + $0x30] sm:$0xff]  ;;  %v2092_v6 = vand.u32 127, %v52_v0  ;;  %v2094_v7 = vshrl.u32 %v52_v0, 7  ;;  %v221_v8 = vld [vmem:[%s3363_s1 + $0x28] sm:$0xff]  ;;  %v220_v9 = vld [vmem:[%s3363_s1 + $0x20] sm:$0xff] }
   0x3   :  { %1598 = vmatpush1.msk.msra.mxu0 %vm334_vm0, %v224_v2  ;;  %v2105_v10 = vld [vmem:[%s3364_s0 + $0x20] sm:$0xff]  ;;  %v219_v12 = vld [vmem:[%s3363_s1 + $0x18] sm:$0xff]  ;;  %v2122_v15 = vld [vmem:[%s3364_s0 + $0x30] sm:$0xff] }
   0x4   :  { %365 = vmatprep.subr.mxu0 %v223_v3  ;;  %vm54_vm1 = vcmp.lt.s32.totalorder %v2092_v6, 3  ;;  %v234_v11 = vsub.s32 1, %v2094_v7  ;;  %v59_v13 = vmul.f32 %v2105_v10, %v2105_v10  ;;  %v2117_v14 = vld [vmem:[%s3365_s2] sm:$0x3]  ;;  %v218_v16 = vld [vmem:[%s3363_s1 + $0x10] sm:$0xff]  ;;  %v61_v18 = vmul.f32 %v2122_v15, %v2122_v15  ;;  %v2135_v19 = vld [vmem:[%s3364_s0 + $0x28] sm:$0xff] }
   0x5   :  { %366 = vmatpush1.msra.mxu0 %v222_v5  ;;  %v2140_v20 = vld [vmem:[%s3364_s0 + $0x38] sm:$0xff]  ;;  %v217_v21 = vld [vmem:[%s3363_s1 + $0x8] sm:$0xff]  ;;  %v60_v23 = vmul.f32 %v2135_v19, %v2135_v19  ;;  %v2154_v25 = vld [vmem:[%s3364_s0 + $0x40] sm:$0xff] }
   0x6   :  { %367 = vmatprep.subr.mxu0 %v221_v8  ;;  %v2128_v17 = vrot.slane %v2117_v14, %v234_v11  ;;  %v91_v22 = vsel %vm54_vm1, %v59_v13, 0.0  ;;  %v62_v24 = vmul.f32 %v2140_v20, %v2140_v20  ;;  %v2159_v26 = vld [vmem:[%s3364_s0 + $0x48] sm:$0xff]  ;;  %v216_v27 = vld [vmem:[%s3363_s1] sm:$0xff]  ;;  %v93_v29 = vsel %vm54_vm1, %v61_v18, 0.0  ;;  %v2174_v32 = vld [vmem:[%s3364_s0 + $0x50] sm:$0xff] }
   0x7   :  { %368 = vmatpush1.msra.mxu0 %v220_v9  ;;  %v132_v28 = vsel %vm119_vm2, %v91_v22, 0.0  ;;  %v63_v30 = vmul.f32 %v2154_v25, %v2154_v25  ;;  %v64_v31 = vmul.f32 %v2159_v26, %v2159_v26  ;;  %v2179_v33 = vld [vmem:[%s3364_s0] sm:$0xff]  ;;  %v138_v34 = vsel %vm119_vm2, %v93_v29, 0.0  ;;  %v2189_v37 = vld [vmem:[%s3364_s0 + $0x58] sm:$0xff]  ;;  %v2212_v45 = vld [vmem:[%s3364_s0 + $0x8] sm:$0xff] }
   0x8   :  { %3370 = vst [vmem:[#allocation2_spill] sm:$0xff] %v2128_v17  ;;  %369 = vmatprep.subr.mxu0 %v219_v12  ;;  %133 = vadd.xlane.f32.xlu0 %v132_v28  ;;  %v92_v35 = vsel %vm54_vm1, %v60_v23, 0.0  ;;  %v94_v36 = vsel %vm54_vm1, %v62_v24, 0.0  ;;  %v65_v41 = vmul.f32 %v2174_v32, %v2174_v32  ;;  %v66_v43 = vmul.f32 %v2189_v37, %v2189_v37  ;;  %v2206_v44 = vld [vmem:[%s3364_s0 + $0x60] sm:$0xff]  ;;  %v2217_v46 = vld [vmem:[%s3364_s0 + $0x68] sm:$0xff]  ;;  %v2234_v53 = vld [vmem:[%s3364_s0 + $0x70] sm:$0xff] }
   0x9   :  { %370 = vmatpush1.msra.mxu0 %v218_v16  ;;  %139 = vadd.xlane.f32.xlu1 %v138_v34  ;;  %v135_v38 = vsel %vm119_vm2, %v92_v35, 0.0  ;;  %v141_v39 = vsel %vm119_vm2, %v94_v36, 0.0  ;;  %v95_v40 = vsel %vm54_vm1, %v63_v30, 0.0  ;;  %v96_v42 = vsel %vm54_vm1, %v64_v31, 0.0  ;;  %v2240_v54 = vld [vmem:[%s3364_s0 + $0x10] sm:$0xff]  ;;  %v2245_v55 = vld [vmem:[%s3364_s0 + $0x78] sm:$0xff] }
   0xa   :  { %371 = vmatprep.subr.mxu0 %v217_v21  ;;  %v144_v47 = vsel %vm119_vm2, %v95_v40, 0.0  ;;  %v147_v48 = vsel %vm119_vm2, %v96_v42, 0.0  ;;  %v97_v49 = vsel %vm54_vm1, %v65_v41, 0.0  ;;  %v67_v50 = vmul.f32 %v2206_v44, %v2206_v44  ;;  %v2262_v62 = vld [vmem:[%s3364_s0 + $0x80] sm:$0xff]  ;;  %v2268_v63 = vld [vmem:[%s3364_s0 + $0x18] sm:$0xff]  ;;  %v2273_v0 = vld [vmem:[%s3364_s0 + $0x88] sm:$0xff] }
   0xb   :  { %372 = vmatpush1.msra.mxu0 %v216_v27  ;;  %v98_v51 = vsel %vm54_vm1, %v66_v43, 0.0  ;;  %v68_v52 = vmul.f32 %v2217_v46, %v2217_v46  ;;  %v150_v56 = vsel %vm119_vm2, %v97_v49, 0.0  ;;  %v69_v59 = vmul.f32 %v2234_v53, %v2234_v53  ;;  %v2290_v11 = vld [vmem:[%s3364_s0 + $0x90] sm:$0xff]  ;;  %v2296_v12 = vld [vmem:[%s3364_s0 + $0x98] sm:$0xff]  ;;  %v2313_v24 = vld [vmem:[%s3364_s0 + $0xa0] sm:$0xff] }
   0xc   :  { %1599 = vmatmul.mubr.msk.f32.vlgmr.msra.gmra.mxu0 %vm119_vm2, %v2179_v33  ;;  %136 = vadd.xlane.f32.xlu0 %v135_v38  ;;  %v153_v57 = vsel %vm119_vm2, %v98_v51, 0.0  ;;  %v99_v58 = vsel %vm54_vm1, %v67_v50, 0.0  ;;  %v70_v61 = vmul.f32 %v2245_v55, %v2245_v55  ;;  %v71_v5 = vmul.f32 %v2262_v62, %v2262_v62  ;;  %v2319_v27 = vld [vmem:[%s3364_s0 + $0xa8] sm:$0xff]  ;;  %v2336_v35 = vld [vmem:[%s3364_s0 + $0xb0] sm:$0xff]  ;;  %v2342_v36 = vld [vmem:[%s3364_s0 + $0xb8] sm:$0xff] }
   0xd   :  { %411 = vmatprep.mubr.f32.mxu0 %v2048_v4  ;;  %142 = vadd.xlane.f32.xlu1 %v141_v39  ;;  %v100_v60 = vsel %vm54_vm1, %v68_v52, 0.0  ;;  %v156_v1 = vsel %vm119_vm2, %v99_v58, 0.0  ;;  %v101_v3 = vsel %vm54_vm1, %v69_v59, 0.0  ;;  %v72_v9 = vmul.f32 %v2273_v0, %v2273_v0  ;;  %v2359_v43 = vld [vmem:[%s3364_s0 + $0xc0] sm:$0xff] }
   0xe   :  { %v159_v2 = vsel %vm119_vm2, %v100_v60, 0.0  ;;  %v102_v8 = vsel %vm54_vm1, %v70_v61, 0.0  ;;  %v162_v13 = vsel %vm119_vm2, %v101_v3, 0.0  ;;  %v103_v18 = vsel %vm54_vm1, %v71_v5, 0.0  ;;  %v2411_v3 = vld [vmem:[%s3364_s0 + $0xe8] sm:$0xff] }
   0xf   :  { %v165_v16 = vsel %vm119_vm2, %v102_v8, 0.0  ;;  %v73_v21 = vmul.f32 %v2290_v11, %v2290_v11  ;;  %v104_v22 = vsel %vm54_vm1, %v72_v9, 0.0  ;;  %v74_v23 = vmul.f32 %v2296_v12, %v2296_v12 }
  0x10   :  { %1600 = vmatmul.mubr.msk.f32.gmra.mxu0 %vm119_vm2, %v2212_v45  ;;  %145 = vadd.xlane.f32.xlu0 %v144_v47  ;;  %v171_v28 = vsel %vm119_vm2, %v104_v22, 0.0  ;;  %v75_v30 = vmul.f32 %v2313_v24, %v2313_v24  ;;  %v76_v34 = vmul.f32 %v2319_v27, %v2319_v27  ;;  %v77_v40 = vmul.f32 %v2336_v35, %v2336_v35  ;;  %v2365_v47 = vld [vmem:[%s3364_s0 + $0xc8] sm:$0xff] }
  0x11   :  { %417 = vmatprep.mubr.f32.mxu0 %v2048_v4  ;;  %148 = vadd.xlane.f32.xlu1 %v147_v48  ;;  %v105_v29 = vsel %vm54_vm1, %v73_v21, 0.0  ;;  %v106_v31 = vsel %vm54_vm1, %v74_v23, 0.0  ;;  %v78_v42 = vmul.f32 %v2342_v36, %v2342_v36  ;;  %v79_v50 = vmul.f32 %v2359_v43, %v2359_v43  ;;  %v2434_v21 = vld [vmem:[%s3364_s0 + $0xf8] sm:$0xff] }
  0x12   :  { %v177_v38 = vsel %vm119_vm2, %v106_v31, 0.0  ;;  %v107_v39 = vsel %vm54_vm1, %v75_v30, 0.0  ;;  %v108_v41 = vsel %vm54_vm1, %v76_v34, 0.0  ;;  %v109_v49 = vsel %vm54_vm1, %v77_v40, 0.0 }
  0x13   :  { %v183_v48 = vsel %vm119_vm2, %v108_v41, 0.0  ;;  %v110_v51 = vsel %vm54_vm1, %v78_v42, 0.0  ;;  %v80_v52 = vmul.f32 %v2365_v47, %v2365_v47  ;;  %v111_v59 = vsel %vm54_vm1, %v79_v50, 0.0 }
  0x14   :  { %1601 = vmatmul.mubr.msk.f32.gmra.mxu0 %vm119_vm2, %v2240_v54  ;;  %151 = vadd.xlane.f32.xlu0 %v150_v56  ;;  %v2382_v56 = vld [vmem:[%s3364_s0 + $0xd0] sm:$0xff]  ;;  %v189_v58 = vsel %vm119_vm2, %v110_v51, 0.0  ;;  %v58_v41 = vmul.f32 %v2268_v63, %v2268_v63 }
  0x15   :  { %423 = vmatprep.mubr.f32.mxu0 %v2048_v4  ;;  %154 = vadd.xlane.f32.xlu1 %v153_v57  ;;  %v2388_v57 = vld [vmem:[%s3364_s0 + $0xd8] sm:$0xff]  ;;  %v81_v60 = vmul.f32 %v2382_v56, %v2382_v56  ;;  %v112_v61 = vsel %vm54_vm1, %v80_v52, 0.0 }
  0x16   :  { %v195_v5 = vsel %vm119_vm2, %v112_v61, 0.0 }
  0x17   :  { %v113_v8 = vsel %vm54_vm1, %v81_v60, 0.0 }
  0x18   :  { %1602 = vmatmul.mubr.msk.f32.gmra.mxu0 %vm119_vm2, %v2268_v63  ;;  %157 = vadd.xlane.f32.xlu0 %v156_v1  ;;  %v82_v1 = vmul.f32 %v2388_v57, %v2388_v57 }
  0x19   :  { %429 = vmatprep.mubr.f32.mxu0 %v2048_v4  ;;  %160 = vadd.xlane.f32.xlu1 %v159_v2  ;;  %v2405_v2 = vld [vmem:[%s3364_s0 + $0xe0] sm:$0xff] }
  0x1a   :  { %v83_v9 = vmul.f32 %v2405_v2, %v2405_v2 }
  0x1c   :  { %1603 = vmatmul.mubr.msk.f32.gmra.mxu0 %vm119_vm2, %v2105_v10  ;;  %163 = vadd.xlane.f32.xlu0 %v162_v13  ;;  %v168_v10 = vsel %vm119_vm2, %v103_v18, 0.0  ;;  %v114_v13 = vsel %vm54_vm1, %v82_v1, 0.0  ;;  %v2428_v18 = vld [vmem:[%s3364_s0 + $0xf0] sm:$0xff]  ;;  %v115_v23 = vsel %vm54_vm1, %v83_v9, 0.0 }
  0x1d   :  { %435 = vmatprep.mubr.f32.mxu0 %v2048_v4  ;;  %166 = vadd.xlane.f32.xlu1 %v165_v16  ;;  %v84_v16 = vmul.f32 %v2411_v3, %v2411_v3  ;;  %v201_v22 = vsel %vm119_vm2, %v114_v13, 0.0  ;;  %v204_v30 = vsel %vm119_vm2, %v115_v23, 0.0 }
  0x20   :  { %1604 = vmatmul.mubr.msk.f32.gmra.mxu0 %vm119_vm2, %v2135_v19  ;;  %169 = vadd.xlane.f32.xlu0 %v168_v10  ;;  %v174_v19 = vsel %vm119_vm2, %v105_v29, 0.0  ;;  %v85_v10 = vmul.f32 %v2428_v18, %v2428_v18  ;;  %v86_v29 = vmul.f32 %v2434_v21, %v2434_v21 }
  0x21   :  { %441 = vmatprep.mubr.f32.mxu0 %v2048_v4  ;;  %172 = vadd.xlane.f32.xlu1 %v171_v28  ;;  %v116_v28 = vsel %vm54_vm1, %v84_v16, 0.0 }
  0x22   :  { %v207_v31 = vsel %vm119_vm2, %v116_v28, 0.0  ;;  %v117_v34 = vsel %vm54_vm1, %v85_v10, 0.0 }
  0x24   :  { %1605 = vmatmul.mubr.msk.f32.gmra.mxu0 %vm119_vm2, %v2122_v15  ;;  %175 = vadd.xlane.f32.xlu0 %v174_v19  ;;  %v180_v15 = vsel %vm119_vm2, %v107_v39, 0.0  ;;  %v118_v19 = vsel %vm54_vm1, %v86_v29, 0.0  ;;  %v210_v39 = vsel %vm119_vm2, %v117_v34, 0.0 }
  0x25   :  { %447 = vmatprep.mubr.f32.mxu0 %v2048_v4  ;;  %178 = vadd.xlane.f32.xlu1 %v177_v38  ;;  %v56_v38 = vmul.f32 %v2212_v45, %v2212_v45  ;;  %v213_v40 = vsel %vm119_vm2, %v118_v19, 0.0 }
  0x27   :  { %v88_v45 = vsel %vm54_vm1, %v56_v38, 0.0 }
  0x28   :  { %1606 = vmatmul.mubr.msk.f32.gmra.mxu0 %vm119_vm2, %v2140_v20  ;;  %181 = vadd.xlane.f32.xlu0 %v180_v15  ;;  %v186_v20 = vsel %vm119_vm2, %v109_v49, 0.0  ;;  %v123_v15 = vsel %vm119_vm2, %v88_v45, 0.0 }
  0x29   :  { %453 = vmatprep.mubr.f32.mxu0 %v2048_v4  ;;  %184 = vadd.xlane.f32.xlu1 %v183_v48 }
  0x2c   :  { %1607 = vmatmul.mubr.msk.f32.gmra.mxu0 %vm119_vm2, %v2154_v25  ;;  %187 = vadd.xlane.f32.xlu0 %v186_v20  ;;  %v192_v25 = vsel %vm119_vm2, %v111_v59, 0.0 }
  0x2d   :  { %459 = vmatprep.mubr.f32.mxu0 %v2048_v4  ;;  %190 = vadd.xlane.f32.xlu1 %v189_v58 }
  0x30   :  { %1608 = vmatmul.mubr.msk.f32.gmra.mxu0 %vm119_vm2, %v2159_v26  ;;  %193 = vadd.xlane.f32.xlu0 %v192_v25  ;;  %v198_v26 = vsel %vm119_vm2, %v113_v8, 0.0 }
  0x31   :  { %465 = vmatprep.mubr.f32.mxu0 %v2048_v4  ;;  %196 = vadd.xlane.f32.xlu1 %v195_v5 }
  0x34   :  { %1609 = vmatmul.mubr.msk.f32.gmra.mxu0 %vm119_vm2, %v2174_v32  ;;  %199 = vadd.xlane.f32.xlu0 %v198_v26  ;;  %v55_v32 = vmul.f32 %v2179_v33, %v2179_v33 }
  0x35   :  { %471 = vmatprep.mubr.f32.mxu0 %v2048_v4  ;;  %202 = vadd.xlane.f32.xlu1 %v201_v22 }
  0x36   :  { %v87_v33 = vsel %vm54_vm1, %v55_v32, 0.0 }
  0x37   :  { %v120_v42 = vsel %vm119_vm2, %v87_v33, 0.0 }
  0x38   :  { %1610 = vmatmul.mubr.msk.f32.gmra.mxu0 %vm119_vm2, %v2189_v37  ;;  %205 = vadd.xlane.f32.xlu0 %v204_v30  ;;  %v57_v37 = vmul.f32 %v2240_v54, %v2240_v54 }
  0x39   :  { %477 = vmatprep.mubr.f32.mxu0 %v2048_v4  ;;  %208 = vadd.xlane.f32.xlu1 %v207_v31 }
  0x3a   :  { %v89_v54 = vsel %vm54_vm1, %v57_v37, 0.0 }
  0x3b   :  { %v126_v63 = vsel %vm119_vm2, %v89_v54, 0.0 }
  0x3c   :  { %1611 = vmatmul.mubr.msk.f32.gmra.mxu0 %vm119_vm2, %v2206_v44  ;;  %211 = vadd.xlane.f32.xlu0 %v210_v39  ;;  %v90_v44 = vsel %vm54_vm1, %v58_v41, 0.0 }
  0x3d   :  { %483 = vmatprep.mubr.f32.mxu0 %v2048_v4  ;;  %214 = vadd.xlane.f32.xlu1 %v213_v40  ;;  %v129_v48 = vsel %vm119_vm2, %v90_v44, 0.0 }
  0x40   :  { %1612 = vmatmul.mubr.msk.f32.gmra.mxu0 %vm119_vm2, %v2217_v46  ;;  %121 = vadd.xlane.f32.xlu0 %v120_v42 }
  0x41   :  { %489 = vmatprep.mubr.f32.mxu0 %v2048_v4  ;;  %124 = vadd.xlane.f32.xlu1 %v123_v15 }
  0x44   :  { %1613 = vmatmul.mubr.msk.f32.gmra.mxu0 %vm119_vm2, %v2234_v53  ;;  %127 = vadd.xlane.f32.xlu0 %v126_v63 }
  0x45   :  { %495 = vmatprep.mubr.f32.mxu0 %v2048_v4  ;;  %130 = vadd.xlane.f32.xlu1 %v129_v48 }
  0x48   :  { %1614 = vmatmul.mubr.msk.f32.gmra.mxu0 %vm119_vm2, %v2245_v55 }
  0x49   :  { %501 = vmatprep.mubr.f32.mxu0 %v2048_v4 }
  0x4c   :  { %1615 = vmatmul.mubr.msk.f32.gmra.mxu0 %vm119_vm2, %v2262_v62 }
  0x4d   :  { %507 = vmatprep.mubr.f32.mxu0 %v2048_v4 }
  0x50   :  { %1616 = vmatmul.mubr.msk.f32.gmra.mxu0 %vm119_vm2, %v2273_v0 }
  0x51   :  { %513 = vmatprep.mubr.f32.mxu0 %v2048_v4 }
  0x54   :  { %1617 = vmatmul.mubr.msk.f32.gmra.mxu0 %vm119_vm2, %v2290_v11 }
  0x55   :  { %519 = vmatprep.mubr.f32.mxu0 %v2048_v4 }
  0x58   :  { %1618 = vmatmul.mubr.msk.f32.gmra.mxu0 %vm119_vm2, %v2296_v12 }
  0x59   :  { %525 = vmatprep.mubr.f32.mxu0 %v2048_v4 }
  0x5c   :  { %1619 = vmatmul.mubr.msk.f32.gmra.mxu0 %vm119_vm2, %v2313_v24 }
  0x5d   :  { %531 = vmatprep.mubr.f32.mxu0 %v2048_v4 }
  0x60   :  { %1620 = vmatmul.mubr.msk.f32.gmra.mxu0 %vm119_vm2, %v2319_v27 }
  0x61   :  { %537 = vmatprep.mubr.f32.mxu0 %v2048_v4 }
  0x64   :  { %1621 = vmatmul.mubr.msk.f32.gmra.mxu0 %vm119_vm2, %v2336_v35 }
  0x65   :  { %543 = vmatprep.mubr.f32.mxu0 %v2048_v4 }
  0x68   :  { %1622 = vmatmul.mubr.msk.f32.gmra.mxu0 %vm119_vm2, %v2342_v36 }
  0x69   :  { %549 = vmatprep.mubr.f32.mxu0 %v2048_v4 }
  0x6c   :  { %1623 = vmatmul.mubr.msk.f32.gmra.mxu0 %vm119_vm2, %v2359_v43 }
  0x6d   :  { %555 = vmatprep.mubr.f32.mxu0 %v2048_v4 }
  0x70   :  { %1624 = vmatmul.mubr.msk.f32.gmra.mxu0 %vm119_vm2, %v2365_v47 }
  0x71   :  { %561 = vmatprep.mubr.f32.mxu0 %v2048_v4 }
  0x74   :  { %1625 = vmatmul.mubr.msk.f32.gmra.mxu0 %vm119_vm2, %v2382_v56 }
  0x75   :  { %567 = vmatprep.mubr.f32.mxu0 %v2048_v4 }
  0x78   :  { %1626 = vmatmul.mubr.msk.f32.gmra.mxu0 %vm119_vm2, %v2388_v57 }
  0x79   :  { %573 = vmatprep.mubr.f32.mxu0 %v2048_v4 }
  0x7c   :  { %1627 = vmatmul.mubr.msk.f32.gmra.mxu0 %vm119_vm2, %v2405_v2 }
  0x7d   :  { %579 = vmatprep.mubr.f32.mxu0 %v2048_v4 }
  0x80   :  { %1628 = vmatmul.mubr.msk.f32.gmra.mxu0 %vm119_vm2, %v2411_v3 }
  0x81   :  { %585 = vmatprep.mubr.f32.mxu0 %v2048_v4 }
  0x84   :  { %1629 = vmatmul.mubr.msk.f32.gmra.mxu0 %vm119_vm2, %v2428_v18 }
  0x85   :  { %591 = vmatprep.mubr.f32.mxu0 %v2048_v4  ;;  %v230_v4 = vsub.s32 0, %v2094_v7 }
  0x87   :  { %v2558_v36 = vrot.slane %v2117_v14, %v230_v4 }
  0x88   :  { %1630 = vmatmul.mubr.msk.f32.gmra.mxu0 %vm119_vm2, %v2434_v21 }
  0x91   :  { %v134_v47 = vpop.xlane.xlu0 %133 }
  0x92   :  { %v140_v61 = vpop.xlane.xlu1 %139 }
  0x95   :  { %v137_v58 = vpop.xlane.xlu0 %136 }
  0x96   :  { %v143_v18 = vpop.xlane.xlu1 %142 }
  0x99   :  { %v146_v29 = vpop.xlane.xlu0 %145 }
  0x9a   :  { %v149_v39 = vpop.xlane.xlu1 %148 }
  0x9d   :  { %v152_v15 = vpop.xlane.xlu0 %151 }
  0xcc   :  { %v2539_v6 = vpop.f32.mrf.mxu0 }
  0xce   :  { %v409_v46 = vpop.f32.mrf.mxu0 }
  0xcf   :  { %v2542_v53 = vadd.f32 %v409_v46, %v2128_v17 }
  0xd0   :  { %v2544_v55 = vpop.f32.mrf.mxu0 }
  0xd1   :  { %3371 = vst [vmem:[#allocation3_spill] sm:$0xff] %v2542_v53 }
  0xd2   :  { %v415_v62 = vpop.f32.mrf.mxu0 }
  0xd3   :  { %v2547_v0 = vadd.f32 %v415_v62, %v2128_v17 }
  0xd4   :  { %v2549_v11 = vpop.f32.mrf.mxu0 }
  0xd5   :  { %3372 = vst [vmem:[#allocation4_spill] sm:$0xff] %v2547_v0 }
  0xd6   :  { %v421_v12 = vpop.f32.mrf.mxu0 }
  0xd7   :  { %v2553_v24 = vadd.f32 %v421_v12, %v2128_v17  ;;  %v155_v12 = vpop.xlane.xlu1 %154 }
  0xd8   :  { %v2555_v27 = vpop.f32.mrf.mxu0 }
  0xd9   :  { %3373 = vst [vmem:[#allocation5_spill] sm:$0xff] %v2553_v24 }
  0xda   :  { %v427_v35 = vpop.f32.mrf.mxu0 }
  0xdb   :  { %v2561_v43 = vadd.f32 %v427_v35, %v2128_v17 }
  0xdc   :  { %v431_v49 = vpop.f32.mrf.mxu0 }
  0xdd   :  { %3374 = vst [vmem:[#allocation6_spill] sm:$0xff] %v2561_v43  ;;  %v432_v50 = vadd.f32 %v431_v49, %v2558_v36 }
  0xde   :  { %v433_v51 = vpop.f32.mrf.mxu0 }
  0xdf   :  { %v602_v52 = vadd.f32 %v432_v50, %v134_v47  ;;  %v2565_v7 = vadd.f32 %v433_v51, %v2128_v17 }
  0xe0   :  { %v437_v56 = vpop.f32.mrf.mxu0 }
  0xe1   :  { %v2567_v57 = vmax.f32 %v602_v52, 0.0  ;;  %v438_v20 = vadd.f32 %v437_v56, %v2558_v36  ;;  %v158_v52 = vpop.xlane.xlu0 %157 }
  0xe2   :  { %v439_v14 = vpop.f32.mrf.mxu0 }
  0xe3   :  { %v603_v59 = vadd.f32 %v438_v20, %v137_v58  ;;  %v2571_v60 = vadd.f32 %v439_v14, %v2128_v17  ;;  %702 = vmin.xlane.f32.xlu0 %v2567_v57 }
  0xe4   :  { %v443_v1 = vpop.f32.mrf.mxu0 }
  0xe5   :  { %v2574_v2 = vmax.f32 %v603_v59, 0.0  ;;  %v444_v3 = vadd.f32 %v443_v1, %v2558_v36  ;;  %v161_v1 = vpop.xlane.xlu1 %160 }
  0xe6   :  { %v445_v25 = vpop.f32.mrf.mxu0 }
  0xe7   :  { %v604_v5 = vadd.f32 %v444_v3, %v140_v61  ;;  %v2578_v8 = vadd.f32 %v445_v25, %v2128_v17  ;;  %704 = vmin.xlane.f32.xlu1 %v2574_v2 }
  0xe8   :  { %v449_v9 = vpop.f32.mrf.mxu0 }
  0xe9   :  { %v2581_v13 = vmax.f32 %v604_v5, 0.0  ;;  %v450_v16 = vadd.f32 %v449_v9, %v2558_v36 }
  0xea   :  { %v451_v21 = vpop.f32.mrf.mxu0 }
  0xeb   :  { %v605_v26 = vadd.f32 %v450_v16, %v143_v18  ;;  %v2585_v22 = vadd.f32 %v451_v21, %v2128_v17  ;;  %706 = vmin.xlane.f32.xlu0 %v2581_v13  ;;  %v164_v21 = vpop.xlane.xlu0 %163 }
  0xec   :  { %v455_v23 = vpop.f32.mrf.mxu0 }
  0xed   :  { %v2588_v10 = vmax.f32 %v605_v26, 0.0  ;;  %v456_v28 = vadd.f32 %v455_v23, %v2558_v36 }
  0xee   :  { %v457_v30 = vpop.f32.mrf.mxu0 }
  0xef   :  { %v606_v31 = vadd.f32 %v456_v28, %v146_v29  ;;  %v2592_v34 = vadd.f32 %v457_v30, %v2128_v17  ;;  %708 = vmin.xlane.f32.xlu1 %v2588_v10 }
  0xf0   :  { %v461_v32 = vpop.f32.mrf.mxu0 }
  0xf1   :  { %v2595_v19 = vmax.f32 %v606_v31, 0.0  ;;  %v462_v38 = vadd.f32 %v461_v32, %v2558_v36  ;;  %v167_v32 = vpop.xlane.xlu1 %166 }
  0xf2   :  { %v463_v40 = vpop.f32.mrf.mxu0 }
  0xf3   :  { %v607_v33 = vadd.f32 %v462_v38, %v149_v39  ;;  %v2599_v37 = vadd.f32 %v463_v40, %v2128_v17  ;;  %710 = vmin.xlane.f32.xlu0 %v2595_v19 }
  0xf4   :  { %v467_v45 = vpop.f32.mrf.mxu0 }
  0xf5   :  { %v2602_v41 = vmax.f32 %v607_v33, 0.0  ;;  %v468_v42 = vadd.f32 %v467_v45, %v2558_v36 }
  0xf6   :  { %v469_v54 = vpop.f32.mrf.mxu0 }
  0xf7   :  { %v608_v44 = vadd.f32 %v468_v42, %v152_v15  ;;  %v2606_v63 = vadd.f32 %v469_v54, %v2128_v17  ;;  %712 = vmin.xlane.f32.xlu1 %v2602_v41  ;;  %v170_v15 = vpop.xlane.xlu0 %169 }
  0xf8   :  { %v473_v48 = vpop.f32.mrf.mxu0 }
  0xf9   :  { %v2609_v46 = vmax.f32 %v608_v44, 0.0  ;;  %v474_v62 = vadd.f32 %v473_v48, %v2558_v36 }
  0xfa   :  { %v475_v4 = vpop.f32.mrf.mxu0 }
  0xfb   :  { %v609_v35 = vadd.f32 %v474_v62, %v155_v12  ;;  %v2613_v47 = vadd.f32 %v475_v4, %v2128_v17  ;;  %714 = vmin.xlane.f32.xlu0 %v2609_v46 }
  0xfc   :  { %v479_v49 = vpop.f32.mrf.mxu0 }
  0xfd   :  { %v2616_v50 = vmax.f32 %v609_v35, 0.0  ;;  %v480_v51 = vadd.f32 %v479_v49, %v2558_v36  ;;  %v173_v35 = vpop.xlane.xlu1 %172 }
  0xfe   :  { %v481_v56 = vpop.f32.mrf.mxu0 }
  0xff   :  { %v610_v20 = vadd.f32 %v480_v51, %v158_v52  ;;  %v2620_v58 = vadd.f32 %v481_v56, %v2128_v17  ;;  %716 = vmin.xlane.f32.xlu1 %v2616_v50 }
 0x100   :  { %v485_v14 = vpop.f32.mrf.mxu0 }
 0x101   :  { %v2623_v59 = vmax.f32 %v610_v20, 0.0  ;;  %v486_v61 = vadd.f32 %v485_v14, %v2558_v36 }
 0x102   :  { %v487_v3 = vpop.f32.mrf.mxu0 }
 0x103   :  { %v611_v25 = vadd.f32 %v486_v61, %v161_v1  ;;  %v2627_v5 = vadd.f32 %v487_v3, %v2128_v17  ;;  %718 = vmin.xlane.f32.xlu0 %v2623_v59  ;;  %v176_v61 = vpop.xlane.xlu0 %175 }
 0x104   :  { %v491_v9 = vpop.f32.mrf.mxu0 }
 0x105   :  { %v2630_v16 = vmax.f32 %v611_v25, 0.0  ;;  %v492_v18 = vadd.f32 %v491_v9, %v2558_v36 }
 0x106   :  { %v493_v26 = vpop.f32.mrf.mxu0 }
 0x107   :  { %v612_v23 = vadd.f32 %v492_v18, %v164_v21  ;;  %v2634_v28 = vadd.f32 %v493_v26, %v2128_v17  ;;  %720 = vmin.xlane.f32.xlu1 %v2630_v16  ;;  %v179_v26 = vpop.xlane.xlu1 %178 }
 0x108   :  { %v497_v29 = vpop.f32.mrf.mxu0 }
 0x109   :  { %v2637_v30 = vmax.f32 %v612_v23, 0.0  ;;  %v498_v31 = vadd.f32 %v497_v29, %v2558_v36 }
 0x10a   :  { %v499_v38 = vpop.f32.mrf.mxu0 }
 0x10b   :  { %v613_v39 = vadd.f32 %v498_v31, %v167_v32  ;;  %v2641_v40 = vadd.f32 %v499_v38, %v2128_v17  ;;  %722 = vmin.xlane.f32.xlu0 %v2637_v30 }
 0x10c   :  { %v503_v33 = vpop.f32.mrf.mxu0 }
 0x10d   :  { %v2644_v45 = vmax.f32 %v613_v39, 0.0  ;;  %v504_v42 = vadd.f32 %v503_v33, %v2558_v36  ;;  %v182_v33 = vpop.xlane.xlu0 %181 }
 0x10e   :  { %v505_v54 = vpop.f32.mrf.mxu0 }
 0x10f   :  { %v614_v44 = vadd.f32 %v504_v42, %v170_v15  ;;  %v2648_v48 = vadd.f32 %v505_v54, %v2128_v17  ;;  %724 = vmin.xlane.f32.xlu1 %v2644_v45 }
 0x110   :  { %v509_v62 = vpop.f32.mrf.mxu0 }
 0x111   :  { %v2651_v12 = vmax.f32 %v614_v44, 0.0  ;;  %v510_v4 = vadd.f32 %v509_v62, %v2558_v36 }
 0x112   :  { %v511_v49 = vpop.f32.mrf.mxu0 }
 0x113   :  { %v615_v51 = vadd.f32 %v510_v4, %v173_v35  ;;  %v2655_v52 = vadd.f32 %v511_v49, %v2128_v17  ;;  %726 = vmin.xlane.f32.xlu0 %v2651_v12  ;;  %v185_v35 = vpop.xlane.xlu1 %184 }
 0x114   :  { %v515_v56 = vpop.f32.mrf.mxu0 }
 0x115   :  { %v2658_v20 = vmax.f32 %v615_v51, 0.0  ;;  %v516_v14 = vadd.f32 %v515_v56, %v2558_v36 }
 0x116   :  { %v517_v1 = vpop.f32.mrf.mxu0 }
 0x117   :  { %v616_v3 = vadd.f32 %v516_v14, %v176_v61  ;;  %v2662_v25 = vadd.f32 %v517_v1, %v2128_v17  ;;  %728 = vmin.xlane.f32.xlu1 %v2658_v20 }
 0x118   :  { %v521_v9 = vpop.f32.mrf.mxu0 }
 0x119   :  { %v2665_v18 = vmax.f32 %v616_v3, 0.0  ;;  %v522_v21 = vadd.f32 %v521_v9, %v2558_v36  ;;  %v188_v3 = vpop.xlane.xlu0 %187 }
 0x11a   :  { %v523_v23 = vpop.f32.mrf.mxu0 }
 0x11b   :  { %v617_v29 = vadd.f32 %v522_v21, %v179_v26  ;;  %v2669_v31 = vadd.f32 %v523_v23, %v2128_v17  ;;  %730 = vmin.xlane.f32.xlu0 %v2665_v18 }
 0x11c   :  { %v527_v32 = vpop.f32.mrf.mxu0 }
 0x11d   :  { %v2672_v38 = vmax.f32 %v617_v29, 0.0  ;;  %v528_v39 = vadd.f32 %v527_v32, %v2558_v36 }
 0x11e   :  { %v529_v42 = vpop.f32.mrf.mxu0 }
 0x11f   :  { %v618_v15 = vadd.f32 %v528_v39, %v182_v33  ;;  %v2676_v54 = vadd.f32 %v529_v42, %v2128_v17  ;;  %732 = vmin.xlane.f32.xlu1 %v2672_v38  ;;  %v191_v39 = vpop.xlane.xlu1 %190 }
 0x120   :  { %v533_v44 = vpop.f32.mrf.mxu0 }
 0x121   :  { %v2679_v62 = vmax.f32 %v618_v15, 0.0  ;;  %v534_v4 = vadd.f32 %v533_v44, %v2558_v36 }
 0x122   :  { %v535_v49 = vpop.f32.mrf.mxu0 }
 0x123   :  { %v619_v51 = vadd.f32 %v534_v4, %v185_v35  ;;  %v2683_v56 = vadd.f32 %v535_v49, %v2128_v17  ;;  %734 = vmin.xlane.f32.xlu0 %v2679_v62  ;;  %v194_v4 = vpop.xlane.xlu0 %193 }
 0x124   :  { %v539_v14 = vpop.f32.mrf.mxu0 }
 0x125   :  { %3375 = vst [vmem:[#allocation7_spill] sm:$0xff] %v2683_v56  ;;  %v2686_v61 = vmax.f32 %v619_v51, 0.0  ;;  %v540_v1 = vadd.f32 %v539_v14, %v2558_v36 }
 0x126   :  { %v541_v9 = vpop.f32.mrf.mxu0 }
 0x127   :  { %v620_v21 = vadd.f32 %v540_v1, %v188_v3  ;;  %v2690_v26 = vadd.f32 %v541_v9, %v2128_v17  ;;  %736 = vmin.xlane.f32.xlu1 %v2686_v61 }
 0x128   :  { %v545_v23 = vpop.f32.mrf.mxu0 }
 0x129   :  { %3376 = vst [vmem:[#allocation8_spill] sm:$0xff] %v2690_v26  ;;  %v2693_v29 = vmax.f32 %v620_v21, 0.0  ;;  %v546_v32 = vadd.f32 %v545_v23, %v2558_v36  ;;  %v197_v23 = vpop.xlane.xlu1 %196 }
 0x12a   :  { %v547_v33 = vpop.f32.mrf.mxu0 }
 0x12b   :  { %v621_v42 = vadd.f32 %v546_v32, %v191_v39  ;;  %v2697_v15 = vadd.f32 %v547_v33, %v2128_v17  ;;  %738 = vmin.xlane.f32.xlu0 %v2693_v29  ;;  %v200_v39 = vpop.xlane.xlu0 %199 }
 0x12c   :  { %v551_v44 = vpop.f32.mrf.mxu0 }
 0x12d   :  { %3377 = vst [vmem:[#allocation9_spill] sm:$0xff] %v2697_v15  ;;  %v2700_v35 = vmax.f32 %v621_v42, 0.0  ;;  %v552_v49 = vadd.f32 %v551_v44, %v2558_v36 }
 0x12e   :  { %v553_v51 = vpop.f32.mrf.mxu0 }
 0x12f   :  { %v622_v14 = vadd.f32 %v552_v49, %v194_v4  ;;  %v2704_v1 = vadd.f32 %v553_v51, %v2128_v17  ;;  %740 = vmin.xlane.f32.xlu1 %v2700_v35 }
 0x130   :  { %v557_v3 = vpop.f32.mrf.mxu0 }
 0x131   :  { %3378 = vst [vmem:[#allocation10_spill] sm:$0xff] %v2704_v1  ;;  %v2707_v9 = vmax.f32 %v622_v14, 0.0  ;;  %v558_v21 = vadd.f32 %v557_v3, %v2558_v36  ;;  %v203_v3 = vpop.xlane.xlu1 %202 }
 0x132   :  { %v559_v32 = vpop.f32.mrf.mxu0 }
 0x133   :  { %v623_v33 = vadd.f32 %v558_v21, %v197_v23  ;;  %v2711_v42 = vadd.f32 %v559_v32, %v2128_v17  ;;  %742 = vmin.xlane.f32.xlu0 %v2707_v9  ;;  %v206_v21 = vpop.xlane.xlu0 %205 }
 0x134   :  { %v563_v44 = vpop.f32.mrf.mxu0 }
 0x135   :  { %3379 = vst [vmem:[#allocation11_spill] sm:$0xff] %v2711_v42  ;;  %v2714_v4 = vmax.f32 %v623_v33, 0.0  ;;  %v564_v49 = vadd.f32 %v563_v44, %v2558_v36 }
 0x136   :  { %v565_v51 = vpop.f32.mrf.mxu0 }
 0x137   :  { %v624_v43 = vadd.f32 %v564_v49, %v200_v39  ;;  %v2718_v14 = vadd.f32 %v565_v51, %v2128_v17  ;;  %744 = vmin.xlane.f32.xlu1 %v2714_v4  ;;  %v209_v51 = vpop.xlane.xlu1 %208  ;;  %v212_v42 = vpop.xlane.xlu0 %211 }
 0x138   :  { %v569_v24 = vpop.f32.mrf.mxu0 }
 0x139   :  { %3380 = vst [vmem:[#allocation12_spill] sm:$0xff] %v2718_v14  ;;  %v2721_v23 = vmax.f32 %v624_v43, 0.0  ;;  %v570_v32 = vadd.f32 %v569_v24, %v2558_v36 }
 0x13a   :  { %v571_v0 = vpop.f32.mrf.mxu0 }
 0x13b   :  { %v625_v53 = vadd.f32 %v570_v32, %v203_v3  ;;  %v2725_v33 = vadd.f32 %v571_v0, %v2128_v17  ;;  %746 = vmin.xlane.f32.xlu0 %v2721_v23 }
 0x13c   :  { %v575_v39 = vpop.f32.mrf.mxu0 }
 0x13d   :  { %3381 = vst [vmem:[#allocation13_spill] sm:$0xff] %v2725_v33  ;;  %v2728_v44 = vmax.f32 %v625_v53, 0.0  ;;  %v576_v49 = vadd.f32 %v575_v39, %v2558_v36  ;;  %v215_v39 = vpop.xlane.xlu1 %214 }
 0x13e   :  { %v577_v14 = vpop.f32.mrf.mxu0 }
 0x13f   :  { %v626_v1 = vadd.f32 %v576_v49, %v206_v21  ;;  %v2732_v43 = vadd.f32 %v577_v14, %v2128_v17  ;;  %748 = vmin.xlane.f32.xlu1 %v2728_v44  ;;  %v408_v21 = vadd.f32 %v2539_v6, %v2558_v36  ;;  %v122_v49 = vpop.xlane.xlu0 %121  ;;  %v420_v6 = vadd.f32 %v2549_v11, %v2558_v36 }
 0x140   :  { %v581_v24 = vpop.f32.mrf.mxu0 }
 0x141   :  { %3382 = vst [vmem:[#allocation14_spill] sm:$0xff] %v2732_v43  ;;  %v2735_v3 = vmax.f32 %v626_v1, 0.0  ;;  %v582_v0 = vadd.f32 %v581_v24, %v2558_v36 }
 0x142   :  { %v583_v32 = vpop.f32.mrf.mxu0 }
 0x143   :  { %v627_v33 = vadd.f32 %v582_v0, %v209_v51  ;;  %v2739_v53 = vadd.f32 %v583_v32, %v2128_v17  ;;  %750 = vmin.xlane.f32.xlu0 %v2735_v3  ;;  %v598_v51 = vadd.f32 %v408_v21, %v122_v49  ;;  %v414_v32 = vadd.f32 %v2544_v55, %v2558_v36  ;;  %v128_v56 = vpop.xlane.xlu0 %127 }
 0x144   :  { %v587_v14 = vpop.f32.mrf.mxu0  ;;  %v600_v21 = vadd.f32 %v420_v6, %v128_v56  ;;  %v426_v49 = vadd.f32 %v2555_v27, %v2558_v36  ;;  %v762_v27 = vadd.f32 1e-16, %v2567_v57  ;;  %v765_v6 = vadd.f32 1e-16, %v2588_v10 }
 0x145   :  { %3383 = vst [vmem:[#allocation15_spill] sm:$0xff] %v2739_v53  ;;  %v2744_v43 = vmax.f32 %v627_v33, 0.0  ;;  %v588_v1 = vadd.f32 %v587_v14, %v2558_v36  ;;  %v125_v14 = vpop.xlane.xlu1 %124 }
 0x146   :  { %v589_v15 = vpop.f32.mrf.mxu0  ;;  %1920 = vrsqrt.f32 %v762_v27 }
 0x147   :  { %v628_v26 = vadd.f32 %v588_v1, %v212_v42  ;;  %v2748_v24 = vadd.f32 %v589_v15, %v2128_v17  ;;  %752 = vmin.xlane.f32.xlu1 %v2744_v43  ;;  %v2759_v15 = vmax.f32 %v598_v51, 0.0  ;;  %v599_v1 = vadd.f32 %v414_v32, %v125_v14  ;;  %v1107_v32 = vld [vmem:[%s3366_s4 + $0x68] sm:$0xff] }
 0x148   :  { %v593_v0 = vpop.f32.mrf.mxu0  ;;  %v764_v51 = vadd.f32 1e-16, %v2581_v13 }
 0x149   :  { %v2755_v53 = vmax.f32 %v628_v26, 0.0  ;;  %v594_v33 = vadd.f32 %v593_v0, %v2558_v36  ;;  %v131_v17 = vpop.xlane.xlu1 %130  ;;  %v2767_v11 = vmax.f32 %v599_v1, 0.0  ;;  %v2769_v26 = vmax.f32 %v600_v21, 0.0  ;;  %v1108_v0 = vld [vmem:[%s3366_s4 + $0x70] sm:$0xff] }
 0x14a   :  { %v763_v36 = vadd.f32 1e-16, %v2574_v2  ;;  %v766_v21 = vadd.f32 1e-16, %v2595_v19 }
 0x14b   :  { %v629_v42 = vadd.f32 %v594_v33, %v215_v39  ;;  %754 = vmin.xlane.f32.xlu0 %v2755_v53  ;;  %v601_v39 = vadd.f32 %v426_v49, %v131_v17  ;;  %v1109_v17 = vld [vmem:[%s3366_s4 + $0x78] sm:$0xff]  ;;  %v1106_v33 = vld [vmem:[%s3366_s4 + $0x60] sm:$0xff]  ;;  %v1104_v49 = vld [vmem:[%s3366_s4 + $0x50] sm:$0xff] }
 0x14c   :  { %1922 = vrsqrt.f32 %v763_v36  ;;  %1887 = vmatprep.subr.mxu1 %v1109_v17  ;;  %1727 = vmatprep.subr.mxu0 %v1109_v17 }
 0x14d   :  { %v2763_v55 = vmax.f32 %v629_v42, 0.0  ;;  %v2773_v56 = vmax.f32 %v601_v39, 0.0  ;;  %1903 = vmatpush3.msra.mxu1 %v1109_v17  ;;  %1728 = vmatpush3.msra.mxu0 %v1109_v17  ;;  %1924 = vrsqrt.f32 %v764_v51  ;;  %v1105_v42 = vld [vmem:[%s3366_s4 + $0x58] sm:$0xff]  ;;  %v767_v17 = vadd.f32 1e-16, %v2602_v41 }
 0x14e   :  { %1888 = vmatprep.subr.mxu1 %v1108_v0  ;;  %1729 = vmatprep.subr.mxu0 %v1108_v0  ;;  %1926 = vrsqrt.f32 %v765_v6 }
 0x14f   :  { %756 = vmin.xlane.f32.xlu1 %v2763_v55  ;;  %694 = vmin.xlane.f32.xlu0 %v2759_v15  ;;  %1928 = vrsqrt.f32 %v766_v21 }
 0x150   :  { %1904 = vmatpush3.msra.mxu1 %v1108_v0  ;;  %1730 = vmatpush3.msra.mxu0 %v1108_v0  ;;  %1930 = vrsqrt.f32 %v767_v17 }
 0x151   :  { %1889 = vmatprep.subr.mxu1 %v1107_v32  ;;  %1731 = vmatprep.subr.mxu0 %v1107_v32 }
 0x152   :  { %1905 = vmatpush3.msra.mxu1 %v1107_v32  ;;  %1732 = vmatpush3.msra.mxu0 %v1107_v32 }
 0x153   :  { %696 = vmin.xlane.f32.xlu1 %v2767_v11  ;;  %698 = vmin.xlane.f32.xlu0 %v2769_v26  ;;  %v1921_v39 = vpop.eup %1920 }
 0x154   :  { %1890 = vmatprep.subr.mxu1 %v1106_v33  ;;  %1733 = vmatprep.subr.mxu0 %v1106_v33 }
 0x155   :  { %1906 = vmatpush3.msra.mxu1 %v1106_v33  ;;  %1734 = vmatpush3.msra.mxu0 %v1106_v33  ;;  %v768_v33 = vadd.f32 1e-16, %v2609_v46 }
 0x156   :  { %1891 = vmatprep.subr.mxu1 %v1105_v42  ;;  %1735 = vmatprep.subr.mxu0 %v1105_v42 }
 0x157   :  { %700 = vmin.xlane.f32.xlu1 %v2773_v56  ;;  %1907 = vmatpush3.msra.mxu1 %v1105_v42  ;;  %1932 = vrsqrt.f32 %v768_v33 }
 0x158   :  { %1736 = vmatpush3.msra.mxu0 %v1105_v42  ;;  %1892 = vmatprep.subr.mxu1 %v1104_v49 }
 0x159   :  { %1908 = vmatpush3.msra.mxu1 %v1104_v49  ;;  %1737 = vmatprep.subr.mxu0 %v1104_v49  ;;  %v1923_v0 = vpop.eup %1922 }
 0x15a   :  { %1738 = vmatpush3.msra.mxu0 %v1104_v49  ;;  %v1103_v49 = vld [vmem:[%s3366_s4 + $0x48] sm:$0xff] }
 0x15b   :  { %1893 = vmatprep.subr.mxu1 %v1103_v49  ;;  %1739 = vmatprep.subr.mxu0 %v1103_v49 }
 0x15c   :  { %1909 = vmatpush3.msra.mxu1 %v1103_v49  ;;  %1740 = vmatpush3.msra.mxu0 %v1103_v49  ;;  %v1098_v49 = vld [vmem:[%s3366_s4 + $0x20] sm:$0xff] }
 0x16c   :  { %v703_v14 = vpop.xlane.xlu0 %702 }
 0x16d   :  { %v826_v1 = vmul.f32 4.0, %v703_v14  ;;  %v1925_v14 = vpop.eup %1924 }
 0x16f   :  { %vm858_vm3 = vcmp.gt.f32.partialorder %v2567_v57, %v826_v1 }
 0x170   :  { %v705_v27 = vpop.xlane.xlu1 %704  ;;  %v2800_v36 = vsel %vm858_vm3, 0.0, %v1921_v39  ;;  %v1927_v39 = vpop.eup %1926 }
 0x171   :  { %v827_v51 = vmul.f32 4.0, %v705_v27  ;;  %926 = vadd.xlane.f32.xlu0 %v2800_v36 }
 0x173   :  { %vm859_vm4 = vcmp.gt.f32.partialorder %v2574_v2, %v827_v51  ;;  %v769_v2 = vadd.f32 1e-16, %v2616_v50 }
 0x174   :  { %v707_v57 = vpop.xlane.xlu0 %706  ;;  %v2805_v32 = vsel %vm859_vm4, 0.0, %v1923_v0  ;;  %v770_v0 = vadd.f32 1e-16, %v2623_v59 }
 0x175   :  { %v828_v6 = vmul.f32 4.0, %v707_v57  ;;  %928 = vadd.xlane.f32.xlu1 %v2805_v32  ;;  %1934 = vrsqrt.f32 %v769_v2  ;;  %v1929_v57 = vpop.eup %1928 }
 0x176   :  { %1936 = vrsqrt.f32 %v770_v0  ;;  %v1931_v2 = vpop.eup %1930 }
 0x177   :  { %vm860_vm5 = vcmp.gt.f32.partialorder %v2581_v13, %v828_v6  ;;  %v1102_v13 = vld [vmem:[%s3366_s4 + $0x40] sm:$0xff]  ;;  %v1100_v6 = vld [vmem:[%s3366_s4 + $0x30] sm:$0xff]  ;;  %v1933_v0 = vpop.eup %1932 }
 0x178   :  { %v709_v42 = vpop.xlane.xlu1 %708  ;;  %v2810_v1 = vsel %vm860_vm5, 0.0, %v1925_v14  ;;  %1894 = vmatprep.subr.mxu1 %v1102_v13  ;;  %1741 = vmatprep.subr.mxu0 %v1102_v13 }
 0x179   :  { %v829_v21 = vmul.f32 4.0, %v709_v42  ;;  %930 = vadd.xlane.f32.xlu0 %v2810_v1  ;;  %1910 = vmatpush3.msra.mxu1 %v1102_v13 }
 0x17a   :  { %1742 = vmatpush3.msra.mxu0 %v1102_v13 }
 0x17b   :  { %vm861_vm6 = vcmp.gt.f32.partialorder %v2588_v10, %v829_v21  ;;  %v1101_v10 = vld [vmem:[%s3366_s4 + $0x38] sm:$0xff]  ;;  %v771_v21 = vadd.f32 1e-16, %v2630_v16 }
 0x17c   :  { %v711_v27 = vpop.xlane.xlu0 %710  ;;  %v2821_v51 = vsel %vm861_vm6, 0.0, %v1927_v39  ;;  %1895 = vmatprep.subr.mxu1 %v1101_v10  ;;  %1743 = vmatprep.subr.mxu0 %v1101_v10 }
 0x17d   :  { %v830_v17 = vmul.f32 4.0, %v711_v27  ;;  %932 = vadd.xlane.f32.xlu1 %v2821_v51  ;;  %1911 = vmatpush3.msra.mxu1 %v1101_v10  ;;  %1938 = vrsqrt.f32 %v771_v21 }
 0x17e   :  { %1896 = vmatprep.subr.mxu1 %v1100_v6  ;;  %1744 = vmatpush3.msra.mxu0 %v1101_v10  ;;  %v1096_v10 = vld [vmem:[%s3366_s4 + $0x10] sm:$0xff] }
 0x17f   :  { %vm862_vm7 = vcmp.gt.f32.partialorder %v2595_v19, %v830_v17  ;;  %1912 = vmatpush3.msra.mxu1 %v1100_v6  ;;  %v1099_v19 = vld [vmem:[%s3366_s4 + $0x28] sm:$0xff]  ;;  %1745 = vmatprep.subr.mxu0 %v1100_v6  ;;  %v772_v17 = vadd.f32 1e-16, %v2637_v30 }
 0x180   :  { %v713_v33 = vpop.xlane.xlu1 %712  ;;  %v2832_v14 = vsel %vm862_vm7, 0.0, %v1929_v57  ;;  %1897 = vmatprep.subr.mxu1 %v1099_v19  ;;  %1746 = vmatpush3.msra.mxu0 %v1100_v6 }
 0x181   :  { %v831_v42 = vmul.f32 4.0, %v713_v33  ;;  %934 = vadd.xlane.f32.xlu0 %v2832_v14  ;;  %1913 = vmatpush3.msra.mxu1 %v1099_v19  ;;  %1940 = vrsqrt.f32 %v772_v17 }
 0x182   :  { %1898 = vmatprep.subr.mxu1 %v1098_v49  ;;  %1747 = vmatprep.subr.mxu0 %v1099_v19  ;;  %v1935_v21 = vpop.eup %1934 }
 0x183   :  { %vm863_vm8 = vcmp.gt.f32.partialorder %v2602_v41, %v831_v42  ;;  %1914 = vmatpush3.msra.mxu1 %v1098_v49  ;;  %v1097_v41 = vld [vmem:[%s3366_s4 + $0x18] sm:$0xff]  ;;  %1748 = vmatpush3.msra.mxu0 %v1099_v19  ;;  %v773_v42 = vadd.f32 1e-16, %v2644_v45  ;;  %v1094_v19 = vld [vmem:[%s3366_s4] sm:$0xff] }
 0x184   :  { %v715_v39 = vpop.xlane.xlu0 %714  ;;  %v2843_v13 = vsel %vm863_vm8, 0.0, %v1931_v2  ;;  %1899 = vmatprep.subr.mxu1 %v1097_v41  ;;  %1749 = vmatprep.subr.mxu0 %v1098_v49 }
 0x185   :  { %v832_v27 = vmul.f32 4.0, %v715_v39  ;;  %936 = vadd.xlane.f32.xlu1 %v2843_v13  ;;  %1915 = vmatpush3.msra.mxu1 %v1097_v41  ;;  %1942 = vrsqrt.f32 %v773_v42 }
 0x186   :  { %1900 = vmatprep.subr.mxu1 %v1096_v10  ;;  %1750 = vmatpush3.msra.mxu0 %v1098_v49  ;;  %v774_v49 = vadd.f32 1e-16, %v2651_v12 }
 0x187   :  { %vm864_vm9 = vcmp.gt.f32.partialorder %v2609_v46, %v832_v27  ;;  %1916 = vmatpush3.msra.mxu1 %v1096_v10  ;;  %v1095_v46 = vld [vmem:[%s3366_s4 + $0x8] sm:$0xff]  ;;  %1751 = vmatprep.subr.mxu0 %v1097_v41 }
 0x188   :  { %v717_v57 = vpop.xlane.xlu1 %716  ;;  %v2854_v6 = vsel %vm864_vm9, 0.0, %v1933_v0  ;;  %1901 = vmatprep.subr.mxu1 %v1095_v46  ;;  %1752 = vmatpush3.msra.mxu0 %v1097_v41  ;;  %1944 = vrsqrt.f32 %v774_v49  ;;  %v775_v41 = vadd.f32 1e-16, %v2658_v20 }
 0x189   :  { %v833_v33 = vmul.f32 4.0, %v717_v57  ;;  %938 = vadd.xlane.f32.xlu0 %v2854_v6  ;;  %1917 = vmatpush3.msra.mxu1 %v1095_v46 }
 0x18a   :  { %1902 = vmatprep.subr.mxu1 %v1094_v19  ;;  %1753 = vmatprep.subr.mxu0 %v1096_v10  ;;  %1946 = vrsqrt.f32 %v775_v41 }
 0x18b   :  { %vm865_vm10 = vcmp.gt.f32.partialorder %v2616_v50, %v833_v33  ;;  %1918 = vmatpush3.msra.mxu1 %v1094_v19  ;;  %v1937_v50 = vpop.eup %1936  ;;  %1754 = vmatpush3.msra.mxu0 %v1096_v10  ;;  %v776_v10 = vadd.f32 1e-16, %v2665_v18 }
 0x18c   :  { %v719_v2 = vpop.xlane.xlu0 %718  ;;  %v2865_v39 = vsel %vm865_vm10, 0.0, %v1935_v21  ;;  %1755 = vmatprep.subr.mxu0 %v1095_v46  ;;  %v1939_v33 = vpop.eup %1938 }
 0x18d   :  { %v834_v27 = vmul.f32 4.0, %v719_v2  ;;  %940 = vadd.xlane.f32.xlu1 %v2865_v39  ;;  %1756 = vmatpush3.msra.mxu0 %v1095_v46  ;;  %1948 = vrsqrt.f32 %v776_v10 }
 0x18e   :  { %1757 = vmatprep.subr.mxu0 %v1094_v19  ;;  %v1941_v2 = vpop.eup %1940 }
 0x18f   :  { %vm866_vm11 = vcmp.gt.f32.partialorder %v2623_v59, %v834_v27  ;;  %1758 = vmatpush3.msra.mxu0 %v1094_v19 }
 0x190   :  { %v721_v17 = vpop.xlane.xlu1 %720  ;;  %v2870_v0 = vsel %vm866_vm11, 0.0, %v1937_v50 }
 0x191   :  { %v835_v57 = vmul.f32 4.0, %v721_v17  ;;  %942 = vadd.xlane.f32.xlu0 %v2870_v0 }
 0x192   :  { %v1943_v19 = vpop.eup %1942 }
 0x193   :  { %vm867_vm12 = vcmp.gt.f32.partialorder %v2630_v16, %v835_v57  ;;  %v777_v16 = vadd.f32 1e-16, %v2672_v38 }
 0x194   :  { %v723_v42 = vpop.xlane.xlu0 %722  ;;  %v2875_v21 = vsel %vm867_vm12, 0.0, %v1939_v33 }
 0x195   :  { %v836_v59 = vmul.f32 4.0, %v723_v42  ;;  %944 = vadd.xlane.f32.xlu1 %v2875_v21  ;;  %1950 = vrsqrt.f32 %v777_v16  ;;  %v1945_v41 = vpop.eup %1944 }
 0x197   :  { %vm868_vm13 = vcmp.gt.f32.partialorder %v2637_v30, %v836_v59  ;;  %v778_v30 = vadd.f32 1e-16, %v2679_v62  ;;  %v1947_v10 = vpop.eup %1946 }
 0x198   :  { %v725_v46 = vpop.xlane.xlu1 %724  ;;  %v2880_v27 = vsel %vm868_vm13, 0.0, %v1941_v2 }
 0x199   :  { %v837_v49 = vmul.f32 4.0, %v725_v46  ;;  %946 = vadd.xlane.f32.xlu0 %v2880_v27  ;;  %1952 = vrsqrt.f32 %v778_v30 }
 0x19a   :  { %v1949_v16 = vpop.eup %1948 }
 0x19b   :  { %vm869_vm14 = vcmp.gt.f32.partialorder %v2644_v45, %v837_v49  ;;  %v779_v45 = vadd.f32 1e-16, %v2686_v61 }
 0x19c   :  { %v727_v50 = vpop.xlane.xlu0 %726  ;;  %v2885_v17 = vsel %vm869_vm14, 0.0, %v1943_v19 }
 0x19d   :  { %v838_v57 = vmul.f32 4.0, %v727_v50  ;;  %948 = vadd.xlane.f32.xlu1 %v2885_v17  ;;  %1954 = vrsqrt.f32 %v779_v45 }
 0x19f   :  { %vm870_vm15 = vcmp.gt.f32.partialorder %v2651_v12, %v838_v57  ;;  %v780_v12 = vadd.f32 1e-16, %v2693_v29 }
 0x1a0   :  { %v729_v33 = vpop.xlane.xlu1 %728  ;;  %v2890_v42 = vsel %vm870_vm15, 0.0, %v1945_v41 }
 0x1a1   :  { %v839_v59 = vmul.f32 4.0, %v729_v33  ;;  %950 = vadd.xlane.f32.xlu0 %v2890_v42  ;;  %1956 = vrsqrt.f32 %v780_v12 }
 0x1a2   :  { %v1951_v30 = vpop.eup %1950 }
 0x1a3   :  { %vm871_vm0 = vcmp.gt.f32.partialorder %v2658_v20, %v839_v59  ;;  %v781_v20 = vadd.f32 1e-16, %v2700_v35 }
 0x1a4   :  { %v731_v2 = vpop.xlane.xlu0 %730  ;;  %v2895_v46 = vsel %vm871_vm0, 0.0, %v1947_v10 }
 0x1a5   :  { %v840_v49 = vmul.f32 4.0, %v731_v2  ;;  %952 = vadd.xlane.f32.xlu1 %v2895_v46  ;;  %1958 = vrsqrt.f32 %v781_v20 }
 0x1a6   :  { %v1953_v45 = vpop.eup %1952 }
 0x1a7   :  { %vm872_vm1 = vcmp.gt.f32.partialorder %v2665_v18, %v840_v49  ;;  %v782_v18 = vadd.f32 1e-16, %v2707_v9 }
 0x1a8   :  { %v733_v19 = vpop.xlane.xlu1 %732  ;;  %v2900_v50 = vsel %vm872_vm1, 0.0, %v1949_v16 }
 0x1a9   :  { %v841_v57 = vmul.f32 4.0, %v733_v19  ;;  %954 = vadd.xlane.f32.xlu0 %v2900_v50  ;;  %1960 = vrsqrt.f32 %v782_v18 }
 0x1aa   :  { %v1955_v12 = vpop.eup %1954 }
 0x1ab   :  { %vm873_vm2 = vcmp.gt.f32.partialorder %v2672_v38, %v841_v57  ;;  %v783_v38 = vadd.f32 1e-16, %v2714_v4 }
 0x1ac   :  { %v735_v41 = vpop.xlane.xlu0 %734  ;;  %v2905_v33 = vsel %vm873_vm2, 0.0, %v1951_v30 }
 0x1ad   :  { %v842_v59 = vmul.f32 4.0, %v735_v41  ;;  %956 = vadd.xlane.f32.xlu1 %v2905_v33  ;;  %1962 = vrsqrt.f32 %v783_v38 }
 0x1ae   :  { %v1957_v20 = vpop.eup %1956 }
 0x1af   :  { %vm874_vm3 = vcmp.gt.f32.partialorder %v2679_v62, %v842_v59  ;;  %v784_v62 = vadd.f32 1e-16, %v2721_v23 }
 0x1b0   :  { %v737_v10 = vpop.xlane.xlu1 %736  ;;  %v2910_v2 = vsel %vm874_vm3, 0.0, %v1953_v45  ;;  %vm1560_vm3 = vcmask 31744  }
 0x1b1   :  { %v843_v49 = vmul.f32 4.0, %v737_v10  ;;  %958 = vadd.xlane.f32.xlu0 %v2910_v2  ;;  %1964 = vrsqrt.f32 %v784_v62 }
 0x1b2   :  { %v1959_v18 = vpop.eup %1958 }
 0x1b3   :  { %vm875_vm4 = vcmp.gt.f32.partialorder %v2686_v61, %v843_v49  ;;  %v785_v61 = vadd.f32 1e-16, %v2728_v44 }
 0x1b4   :  { %v739_v16 = vpop.xlane.xlu0 %738  ;;  %v2915_v19 = vsel %vm875_vm4, 0.0, %v1955_v12 }
 0x1b5   :  { %v844_v57 = vmul.f32 4.0, %v739_v16  ;;  %960 = vadd.xlane.f32.xlu1 %v2915_v19  ;;  %1966 = vrsqrt.f32 %v785_v61  ;;  %v788_v61 = vadd.f32 1e-16, %v2755_v53 }
 0x1b6   :  { %v1961_v38 = vpop.eup %1960 }
 0x1b7   :  { %vm876_vm5 = vcmp.gt.f32.partialorder %v2693_v29, %v844_v57  ;;  %v786_v29 = vadd.f32 1e-16, %v2735_v3 }
 0x1b8   :  { %v741_v30 = vpop.xlane.xlu1 %740  ;;  %v2920_v41 = vsel %vm876_vm5, 0.0, %v1957_v20 }
 0x1b9   :  { %v845_v59 = vmul.f32 4.0, %v741_v30  ;;  %962 = vadd.xlane.f32.xlu0 %v2920_v41  ;;  %1968 = vrsqrt.f32 %v786_v29 }
 0x1ba   :  { %v1963_v62 = vpop.eup %1962 }
 0x1bb   :  { %vm877_vm6 = vcmp.gt.f32.partialorder %v2700_v35, %v845_v59  ;;  %v787_v35 = vadd.f32 1e-16, %v2744_v43  ;;  %v2940_v59 = vld [vmem:[%s3367_s3 + $0x78] sm:$0xff] }
 0x1bc   :  { %v743_v45 = vpop.xlane.xlu0 %742  ;;  %v2925_v10 = vsel %vm877_vm6, 0.0, %v1959_v18  ;;  %1807 = vmatprep.subr.mxu1 %v2940_v59 }
 0x1bd   :  { %v846_v49 = vmul.f32 4.0, %v743_v45  ;;  %964 = vadd.xlane.f32.xlu1 %v2925_v10  ;;  %1970 = vrsqrt.f32 %v787_v35 }
 0x1be   :  { %v1965_v18 = vpop.eup %1964  ;;  %1972 = vrsqrt.f32 %v788_v61 }
 0x1bf   :  { %vm878_vm7 = vcmp.gt.f32.partialorder %v2707_v9, %v846_v49  ;;  %v758_v49 = vadd.f32 1e-16, %v2759_v15 }
 0x1c0   :  { %v745_v12 = vpop.xlane.xlu1 %744  ;;  %v2930_v16 = vsel %vm878_vm7, 0.0, %v1961_v38  ;;  %v789_v38 = vadd.f32 1e-16, %v2763_v55 }
 0x1c1   :  { %v847_v57 = vmul.f32 4.0, %v745_v12  ;;  %966 = vadd.xlane.f32.xlu0 %v2930_v16  ;;  %1974 = vrsqrt.f32 %v758_v49 }
 0x1c2   :  { %v1967_v12 = vpop.eup %1966  ;;  %1976 = vrsqrt.f32 %v789_v38 }
 0x1c3   :  { %vm879_vm8 = vcmp.gt.f32.partialorder %v2714_v4, %v847_v57 }
 0x1c4   :  { %v747_v20 = vpop.xlane.xlu0 %746  ;;  %v2935_v30 = vsel %vm879_vm8, 0.0, %v1963_v62 }
 0x1c5   :  { %v848_v9 = vmul.f32 4.0, %v747_v20  ;;  %968 = vadd.xlane.f32.xlu1 %v2935_v30  ;;  %v760_v20 = vadd.f32 1e-16, %v2769_v26 }
 0x1c7   :  { %vm880_vm9 = vcmp.gt.f32.partialorder %v2721_v23, %v848_v9  ;;  %v759_v23 = vadd.f32 1e-16, %v2767_v11  ;;  %v1969_v9 = vpop.eup %1968 }
 0x1c8   :  { %v749_v4 = vpop.xlane.xlu1 %748  ;;  %v2946_v45 = vsel %vm880_vm9, 0.0, %v1965_v18 }
 0x1c9   :  { %v849_v29 = vmul.f32 4.0, %v749_v4  ;;  %970 = vadd.xlane.f32.xlu0 %v2946_v45  ;;  %1978 = vrsqrt.f32 %v759_v23  ;;  %v761_v4 = vadd.f32 1e-16, %v2773_v56 }
 0x1ca   :  { %1980 = vrsqrt.f32 %v760_v20  ;;  %v1971_v49 = vpop.eup %1970 }
 0x1cb   :  { %vm881_vm10 = vcmp.gt.f32.partialorder %v2728_v44, %v849_v29  ;;  %1982 = vrsqrt.f32 %v761_v4 }
 0x1cc   :  { %v751_v57 = vpop.xlane.xlu0 %750  ;;  %v2952_v35 = vsel %vm881_vm10, 0.0, %v1967_v12 }
 0x1cd   :  { %v850_v62 = vmul.f32 4.0, %v751_v57  ;;  %972 = vadd.xlane.f32.xlu1 %v2952_v35 }
 0x1cf   :  { %vm882_vm11 = vcmp.gt.f32.partialorder %v2735_v3, %v850_v62  ;;  %v1973_v3 = vpop.eup %1972 }
 0x1d0   :  { %v753_v61 = vpop.xlane.xlu1 %752  ;;  %v2958_v18 = vsel %vm882_vm11, 0.0, %v1969_v9 }
 0x1d1   :  { %v851_v44 = vmul.f32 4.0, %v753_v61  ;;  %974 = vadd.xlane.f32.xlu0 %v2958_v18  ;;  %v1975_v61 = vpop.eup %1974 }
 0x1d3   :  { %vm883_vm12 = vcmp.gt.f32.partialorder %v2744_v43, %v851_v44  ;;  %v1977_v43 = vpop.eup %1976 }
 0x1d4   :  { %v755_v29 = vpop.xlane.xlu0 %754  ;;  %v2963_v12 = vsel %vm883_vm12, 0.0, %v1971_v49 }
 0x1d5   :  { %v852_v38 = vmul.f32 4.0, %v755_v29  ;;  %976 = vadd.xlane.f32.xlu1 %v2963_v12 }
 0x1d7   :  { %vm884_vm13 = vcmp.gt.f32.partialorder %v2755_v53, %v852_v38 }
 0x1d8   :  { %v757_v57 = vpop.xlane.xlu1 %756  ;;  %v695_v23 = vpop.xlane.xlu0 %694  ;;  %v2967_v62 = vsel %vm884_vm13, 0.0, %v1973_v3 }
 0x1d9   :  { %v853_v20 = vmul.f32 4.0, %v757_v57  ;;  %v822_v9 = vmul.f32 4.0, %v695_v23  ;;  %978 = vadd.xlane.f32.xlu0 %v2967_v62  ;;  %v1979_v3 = vpop.eup %1978 }
 0x1da   :  { %v1981_v57 = vpop.eup %1980 }
 0x1db   :  { %vm885_vm14 = vcmp.gt.f32.partialorder %v2763_v55, %v853_v20  ;;  %vm854_vm15 = vcmp.gt.f32.partialorder %v2759_v15, %v822_v9  ;;  %v1983_v9 = vpop.eup %1982 }
 0x1dc   :  { %v697_v44 = vpop.xlane.xlu1 %696  ;;  %v699_v49 = vpop.xlane.xlu0 %698  ;;  %v2972_v4 = vsel %vm885_vm14, 0.0, %v1977_v43  ;;  %v2974_v29 = vsel %vm854_vm15, 0.0, %v1975_v61 }
 0x1dd   :  { %v823_v53 = vmul.f32 4.0, %v697_v44  ;;  %v824_v38 = vmul.f32 4.0, %v699_v49  ;;  %980 = vadd.xlane.f32.xlu1 %v2972_v4  ;;  %918 = vadd.xlane.f32.xlu0 %v2974_v29 }
 0x1df   :  { %vm855_vm0 = vcmp.gt.f32.partialorder %v2767_v11, %v823_v53  ;;  %vm856_vm1 = vcmp.gt.f32.partialorder %v2769_v26, %v824_v38  ;;  %v666_v53 = vmax.f32 %v2565_v7, 0.0 }
 0x1e0   :  { %v701_v55 = vpop.xlane.xlu1 %700  ;;  %v2980_v15 = vsel %vm855_vm0, 0.0, %v1979_v3  ;;  %v2982_v23 = vsel %vm856_vm1, 0.0, %v1981_v57 }
 0x1e1   :  { %v825_v20 = vmul.f32 4.0, %v701_v55  ;;  %920 = vadd.xlane.f32.xlu1 %v2980_v15  ;;  %922 = vadd.xlane.f32.xlu0 %v2982_v23  ;;  %v667_v55 = vmax.f32 %v2571_v60, 0.0  ;;  %v668_v60 = vmax.f32 %v2578_v8, 0.0  ;;  %v1089_v8 = vld [vmem:[%s3367_s3 + $0x58] sm:$0xff] }
 0x1e3   :  { %vm857_vm2 = vcmp.gt.f32.partialorder %v2773_v56, %v825_v20 }
 0x1e4   :  { %v2987_v61 = vsel %vm857_vm2, 0.0, %v1983_v9 }
 0x1e5   :  { %924 = vadd.xlane.f32.xlu1 %v2987_v61 }
 0x1fa   :  { %v927_v11 = vpop.xlane.xlu0 %926 }
 0x1fb   :  { %1984 = vrcp.f32 %v927_v11  ;;  %v1092_v11 = vld [vmem:[%s3367_s3 + $0x70] sm:$0xff] }
 0x1fe   :  { %v929_v26 = vpop.xlane.xlu1 %928 }
 0x1ff   :  { %1986 = vrcp.f32 %v929_v26  ;;  %v1091_v26 = vld [vmem:[%s3367_s3 + $0x68] sm:$0xff] }
 0x202   :  { %v931_v43 = vpop.xlane.xlu0 %930 }
 0x203   :  { %1988 = vrcp.f32 %v931_v43 }
 0x206   :  { %v933_v44 = vpop.xlane.xlu1 %932 }
 0x207   :  { %1990 = vrcp.f32 %v933_v44  ;;  %v1090_v44 = vld [vmem:[%s3367_s3 + $0x60] sm:$0xff] }
 0x208   :  { %v1985_v49 = vpop.eup %1984 }
 0x209   :  { %v991_v38 = vmul.f32 %v1985_v49, %v2800_v36 }
 0x20a   :  { %v935_v3 = vpop.xlane.xlu0 %934 }
 0x20b   :  { %1992 = vrcp.f32 %v935_v3  ;;  %v2992_v56 = vmul.f32 %v991_v38, %v666_v53  ;;  %1765 = vmatprep.mubr.f32.mxu1 %v991_v38  ;;  %v1088_v3 = vld [vmem:[%s3367_s3 + $0x50] sm:$0xff] }
 0x20c   :  { %v1987_v57 = vpop.eup %1986 }
 0x20d   :  { %v993_v20 = vmul.f32 %v1987_v57, %v2805_v32 }
 0x20e   :  { %v937_v9 = vpop.xlane.xlu1 %936 }
 0x20f   :  { %1994 = vrcp.f32 %v937_v9  ;;  %1766 = vmatmul.mubr.f32.vlgmr.msra.gmra.mxu1 %v993_v20  ;;  %v2999_v7 = vmul.f32 %v993_v20, %v667_v55 }
 0x210   :  { %v1989_v36 = vpop.eup %1988  ;;  %1808 = vmatpush3.msra.mxu1 %v2940_v59 }
 0x211   :  { %v995_v32 = vmul.f32 %v1989_v36, %v2810_v1  ;;  %1809 = vmatprep.subr.mxu1 %v1092_v11  ;;  %v669_v1 = vmax.f32 %v2585_v22, 0.0  ;;  %v1087_v22 = vld [vmem:[%s3367_s3 + $0x48] sm:$0xff] }
 0x212   :  { %v939_v43 = vpop.xlane.xlu0 %938  ;;  %1810 = vmatpush3.msra.mxu1 %v1092_v11  ;;  %v1086_v11 = vld [vmem:[%s3367_s3 + $0x40] sm:$0xff] }
 0x213   :  { %1996 = vrcp.f32 %v939_v43  ;;  %1768 = vmatprep.mubr.f32.mxu1 %v995_v32  ;;  %1811 = vmatprep.subr.mxu1 %v1091_v26  ;;  %v3010_v49 = vmul.f32 %v995_v32, %v668_v60  ;;  %v1084_v43 = vld [vmem:[%s3367_s3 + $0x30] sm:$0xff] }
 0x214   :  { %v1991_v59 = vpop.eup %1990  ;;  %1812 = vmatpush3.msra.mxu1 %v1091_v26 }
 0x215   :  { %v997_v53 = vmul.f32 %v1991_v59, %v2821_v51  ;;  %1813 = vmatprep.subr.mxu1 %v1090_v44  ;;  %v670_v51 = vmax.f32 %v2592_v34, 0.0  ;;  %v1085_v34 = vld [vmem:[%s3367_s3 + $0x38] sm:$0xff] }
 0x216   :  { %v941_v38 = vpop.xlane.xlu1 %940  ;;  %1814 = vmatpush3.msra.mxu1 %v1090_v44 }
 0x217   :  { %1998 = vrcp.f32 %v941_v38  ;;  %1769 = vmatmul.mubr.f32.gmra.mxu1 %v997_v53  ;;  %1815 = vmatprep.subr.mxu1 %v1089_v8  ;;  %v3020_v57 = vmul.f32 %v997_v53, %v669_v1  ;;  %v1082_v53 = vld [vmem:[%s3367_s3 + $0x20] sm:$0xff] }
 0x218   :  { %v1993_v55 = vpop.eup %1992  ;;  %1816 = vmatpush3.msra.mxu1 %v1089_v8 }
 0x219   :  { %v999_v20 = vmul.f32 %v1993_v55, %v2832_v14  ;;  %1817 = vmatprep.subr.mxu1 %v1088_v3  ;;  %v671_v14 = vmax.f32 %v2599_v37, 0.0  ;;  %v1083_v37 = vld [vmem:[%s3367_s3 + $0x28] sm:$0xff] }
 0x21a   :  { %v943_v9 = vpop.xlane.xlu0 %942  ;;  %1818 = vmatpush3.msra.mxu1 %v1088_v3 }
 0x21b   :  { %2000 = vrcp.f32 %v943_v9  ;;  %1771 = vmatprep.mubr.f32.mxu1 %v999_v20  ;;  %1819 = vmatprep.subr.mxu1 %v1087_v22  ;;  %v3030_v36 = vmul.f32 %v999_v20, %v670_v51  ;;  %v1080_v51 = vld [vmem:[%s3367_s3 + $0x10] sm:$0xff] }
 0x21c   :  { %v1995_v26 = vpop.eup %1994  ;;  %1820 = vmatpush3.msra.mxu1 %v1087_v22 }
 0x21d   :  { %v1001_v60 = vmul.f32 %v1995_v26, %v2843_v13  ;;  %1821 = vmatprep.subr.mxu1 %v1086_v11  ;;  %v672_v13 = vmax.f32 %v2606_v63, 0.0  ;;  %v1081_v63 = vld [vmem:[%s3367_s3 + $0x18] sm:$0xff] }
 0x21e   :  { %v945_v32 = vpop.xlane.xlu1 %944  ;;  %1822 = vmatpush3.msra.mxu1 %v1086_v11 }
 0x21f   :  { %2002 = vrcp.f32 %v945_v32  ;;  %1772 = vmatmul.mubr.f32.gmra.mxu1 %v1001_v60  ;;  %1823 = vmatprep.subr.mxu1 %v1085_v34  ;;  %v3040_v44 = vmul.f32 %v1001_v60, %v671_v14  ;;  %v675_v32 = vmax.f32 %v2627_v5, 0.0 }
 0x220   :  { %v1997_v59 = vpop.eup %1996  ;;  %1824 = vmatpush3.msra.mxu1 %v1085_v34  ;;  %v1078_v34 = vld [vmem:[%s3367_s3] sm:$0xff] }
 0x221   :  { %v1003_v8 = vmul.f32 %v1997_v59, %v2854_v6  ;;  %1825 = vmatprep.subr.mxu1 %v1084_v43  ;;  %v673_v6 = vmax.f32 %v2613_v47, 0.0  ;;  %v1079_v47 = vld [vmem:[%s3367_s3 + $0x8] sm:$0xff] }
 0x222   :  { %v947_v1 = vpop.xlane.xlu0 %946  ;;  %1826 = vmatpush3.msra.mxu1 %v1084_v43 }
 0x223   :  { %2004 = vrcp.f32 %v947_v1  ;;  %1774 = vmatprep.mubr.f32.mxu1 %v1003_v8  ;;  %1827 = vmatprep.subr.mxu1 %v1083_v37  ;;  %v3050_v38 = vmul.f32 %v1003_v8, %v672_v13 }
 0x224   :  { %v1999_v3 = vpop.eup %1998  ;;  %1828 = vmatpush3.msra.mxu1 %v1083_v37  ;;  %v676_v37 = vmax.f32 %v2634_v28, 0.0  ;;  %v678_v28 = vmax.f32 %v2648_v48, 0.0  ;;  %v680_v48 = vmax.f32 %v2662_v25, 0.0  ;;  %v682_v25 = vmax.f32 %v2676_v54, 0.0 }
 0x225   :  { %v1005_v55 = vmul.f32 %v1999_v3, %v2865_v39  ;;  %1829 = vmatprep.subr.mxu1 %v1082_v53  ;;  %v674_v39 = vmax.f32 %v2620_v58, 0.0 }
 0x226   :  { %v949_v22 = vpop.xlane.xlu1 %948  ;;  %1830 = vmatpush3.msra.mxu1 %v1082_v53 }
 0x227   :  { %2006 = vrcp.f32 %v949_v22  ;;  %1775 = vmatmul.mubr.f32.gmra.mxu1 %v1005_v55  ;;  %1831 = vmatprep.subr.mxu1 %v1081_v63  ;;  %v3060_v20 = vmul.f32 %v1005_v55, %v673_v6 }
 0x228   :  { %v2001_v9 = vpop.eup %2000  ;;  %1832 = vmatpush3.msra.mxu1 %v1081_v63 }
 0x229   :  { %v1007_v11 = vmul.f32 %v2001_v9, %v2870_v0  ;;  %1833 = vmatprep.subr.mxu1 %v1080_v51 }
 0x22a   :  { %v951_v26 = vpop.xlane.xlu0 %950  ;;  %1834 = vmatpush3.msra.mxu1 %v1080_v51 }
 0x22b   :  { %2008 = vrcp.f32 %v951_v26  ;;  %1777 = vmatprep.mubr.f32.mxu1 %v1007_v11  ;;  %1835 = vmatprep.subr.mxu1 %v1079_v47  ;;  %v3070_v14 = vmul.f32 %v1007_v11, %v674_v39 }
 0x22c   :  { %v2003_v60 = vpop.eup %2002  ;;  %1836 = vmatpush3.msra.mxu1 %v1079_v47 }
 0x22d   :  { %v1009_v58 = vmul.f32 %v2003_v60, %v2875_v21  ;;  %1837 = vmatprep.subr.mxu1 %v1078_v34  ;;  %v677_v21 = vmax.f32 %v2641_v40, 0.0  ;;  %v679_v40 = vmax.f32 %v2655_v52, 0.0  ;;  %v681_v52 = vmax.f32 %v2669_v31, 0.0 }
 0x22e   :  { %v953_v0 = vpop.xlane.xlu1 %952  ;;  %1838 = vmatpush3.msra.mxu1 %v1078_v34 }
 0x22f   :  { %2010 = vrcp.f32 %v953_v0  ;;  %1778 = vmatmul.mubr.f32.gmra.mxu1 %v1009_v58  ;;  %v3074_v43 = vmul.f32 %v1009_v58, %v675_v32 }
 0x230   :  { %v2005_v59 = vpop.eup %2004 }
 0x231   :  { %v1011_v13 = vmul.f32 %v2005_v59, %v2880_v27 }
 0x232   :  { %v955_v8 = vpop.xlane.xlu0 %954 }
 0x233   :  { %2012 = vrcp.f32 %v955_v8  ;;  %1780 = vmatprep.mubr.f32.mxu1 %v1011_v13  ;;  %v3078_v1 = vmul.f32 %v1011_v13, %v676_v37  ;;  %v3384_v13 = vld [vmem:[#allocation7_spill] sm:$0xff] }
 0x234   :  { %v2007_v5 = vpop.eup %2006  ;;  %v683_v31 = vmax.f32 %v3384_v13, 0.0 }
 0x235   :  { %v1013_v53 = vmul.f32 %v2007_v5, %v2885_v17 }
 0x236   :  { %v957_v3 = vpop.xlane.xlu1 %956 }
 0x237   :  { %2014 = vrcp.f32 %v957_v3  ;;  %1781 = vmatmul.mubr.f32.gmra.mxu1 %v1013_v53  ;;  %v3082_v63 = vmul.f32 %v1013_v53, %v677_v21  ;;  %v3385_v53 = vld [vmem:[#allocation8_spill] sm:$0xff] }
 0x238   :  { %v2009_v6 = vpop.eup %2008  ;;  %v684_v54 = vmax.f32 %v3385_v53, 0.0 }
 0x239   :  { %v1015_v27 = vmul.f32 %v2009_v6, %v2890_v42 }
 0x23a   :  { %v959_v55 = vpop.xlane.xlu0 %958 }
 0x23b   :  { %2016 = vrcp.f32 %v959_v55  ;;  %1783 = vmatprep.mubr.f32.mxu1 %v1015_v27  ;;  %v3086_v22 = vmul.f32 %v1015_v27, %v678_v28  ;;  %v3386_v27 = vld [vmem:[#allocation9_spill] sm:$0xff] }
 0x23c   :  { %v2011_v51 = vpop.eup %2010  ;;  %v685_v55 = vmax.f32 %v3386_v27, 0.0 }
 0x23d   :  { %v1017_v17 = vmul.f32 %v2011_v51, %v2895_v46 }
 0x23e   :  { %v961_v9 = vpop.xlane.xlu1 %960 }
 0x23f   :  { %2018 = vrcp.f32 %v961_v9  ;;  %1784 = vmatmul.mubr.f32.gmra.mxu1 %v1017_v17  ;;  %v3090_v47 = vmul.f32 %v1017_v17, %v679_v40  ;;  %v3387_v9 = vld [vmem:[#allocation10_spill] sm:$0xff] }
 0x240   :  { %v2013_v39 = vpop.eup %2012 }
 0x241   :  { %v1019_v42 = vmul.f32 %v2013_v39, %v2900_v50  ;;  %v686_v39 = vmax.f32 %v3387_v9, 0.0  ;;  %v595_v9 = vpop.f32.mrf.mxu0 }
 0x242   :  { %v963_v11 = vpop.xlane.xlu0 %962 }
 0x243   :  { %2020 = vrcp.f32 %v963_v11  ;;  %1786 = vmatprep.mubr.f32.mxu1 %v1019_v42  ;;  %v3094_v26 = vmul.f32 %v1019_v42, %v680_v48 }
 0x244   :  { %v2015_v34 = vpop.eup %2014 }
 0x245   :  { %v1021_v46 = vmul.f32 %v2015_v34, %v2905_v33  ;;  %v3388_v34 = vld [vmem:[#allocation11_spill] sm:$0xff] }
 0x246   :  { %v965_v60 = vpop.xlane.xlu1 %964 }
 0x247   :  { %2022 = vrcp.f32 %v965_v60  ;;  %1787 = vmatmul.mubr.f32.gmra.mxu1 %v1021_v46  ;;  %v3098_v32 = vmul.f32 %v1021_v46, %v681_v52  ;;  %v687_v52 = vmax.f32 %v3388_v34, 0.0 }
 0x248   :  { %v2017_v58 = vpop.eup %2016 }
 0x249   :  { %v1023_v50 = vmul.f32 %v2017_v58, %v2910_v2 }
 0x24a   :  { %v967_v0 = vpop.xlane.xlu0 %966 }
 0x24b   :  { %2024 = vrcp.f32 %v967_v0  ;;  %1789 = vmatprep.mubr.f32.mxu1 %v1023_v50  ;;  %v3102_v59 = vmul.f32 %v1023_v50, %v682_v25  ;;  %v3389_v25 = vld [vmem:[#allocation12_spill] sm:$0xff] }
 0x24c   :  { %v2019_v37 = vpop.eup %2018  ;;  %v688_v50 = vmax.f32 %v3389_v25, 0.0 }
 0x24d   :  { %v1025_v33 = vmul.f32 %v2019_v37, %v2915_v19 }
 0x24e   :  { %v969_v8 = vpop.xlane.xlu1 %968 }
 0x24f   :  { %2026 = vrcp.f32 %v969_v8  ;;  %1790 = vmatmul.mubr.f32.gmra.mxu1 %v1025_v33  ;;  %v3106_v5 = vmul.f32 %v1025_v33, %v683_v31  ;;  %v3390_v31 = vld [vmem:[#allocation13_spill] sm:$0xff] }
 0x250   :  { %v2021_v21 = vpop.eup %2020  ;;  %v689_v33 = vmax.f32 %v3390_v31, 0.0 }
 0x251   :  { %v1027_v2 = vmul.f32 %v2021_v21, %v2920_v41 }
 0x252   :  { %v971_v3 = vpop.xlane.xlu0 %970 }
 0x253   :  { %2028 = vrcp.f32 %v971_v3  ;;  %1792 = vmatprep.mubr.f32.mxu1 %v1027_v2  ;;  %v3110_v6 = vmul.f32 %v1027_v2, %v684_v54  ;;  %v3391_v2 = vld [vmem:[#allocation14_spill] sm:$0xff] }
 0x254   :  { %v2023_v28 = vpop.eup %2022 }
 0x255   :  { %v1029_v19 = vmul.f32 %v2023_v28, %v2925_v10 }
 0x256   :  { %v973_v51 = vpop.xlane.xlu1 %972 }
 0x257   :  { %2030 = vrcp.f32 %v973_v51  ;;  %1793 = vmatmul.mubr.f32.gmra.mxu1 %v1029_v19  ;;  %v3114_v40 = vmul.f32 %v1029_v19, %v685_v55 }
 0x258   :  { %v2025_v17 = vpop.eup %2024 }
 0x259   :  { %v1031_v41 = vmul.f32 %v2025_v17, %v2930_v16 }
 0x25a   :  { %v975_v48 = vpop.xlane.xlu0 %974 }
 0x25b   :  { %2032 = vrcp.f32 %v975_v48  ;;  %1795 = vmatprep.mubr.f32.mxu1 %v1031_v41  ;;  %v3118_v42 = vmul.f32 %v1031_v41, %v686_v39 }
 0x25c   :  { %v2027_v11 = vpop.eup %2026 }
 0x25d   :  { %v1033_v10 = vmul.f32 %v2027_v11, %v2935_v30  ;;  %v3393_v11 = vld [vmem:[#allocation2_spill] sm:$0xff] }
 0x25e   :  { %v977_v46 = vpop.xlane.xlu1 %976  ;;  %v596_v34 = vadd.f32 %v595_v9, %v3393_v11 }
 0x25f   :  { %2034 = vrcp.f32 %v977_v46  ;;  %1796 = vmatmul.mubr.f32.gmra.mxu1 %v1033_v10  ;;  %v3122_v60 = vmul.f32 %v1033_v10, %v687_v52 }
 0x260   :  { %v2029_v58 = vpop.eup %2028  ;;  %v693_v25 = vmax.f32 %v596_v34, 0.0 }
 0x261   :  { %v1035_v16 = vmul.f32 %v2029_v58, %v2946_v45  ;;  %v690_v45 = vmax.f32 %v3391_v2, 0.0 }
 0x262   :  { %v979_v0 = vpop.xlane.xlu0 %978 }
 0x263   :  { %2036 = vrcp.f32 %v979_v0  ;;  %1798 = vmatprep.mubr.f32.mxu1 %v1035_v16  ;;  %v3126_v37 = vmul.f32 %v1035_v16, %v688_v50 }
 0x264   :  { %v2031_v13 = vpop.eup %2030 }
 0x265   :  { %v1037_v30 = vmul.f32 %v2031_v13, %v2952_v35  ;;  %v3392_v35 = vld [vmem:[#allocation15_spill] sm:$0xff] }
 0x266   :  { %v981_v8 = vpop.xlane.xlu1 %980  ;;  %v919_v21 = vpop.xlane.xlu0 %918  ;;  %v691_v51 = vmax.f32 %v3392_v35, 0.0 }
 0x267   :  { %2038 = vrcp.f32 %v981_v8  ;;  %1799 = vmatmul.mubr.f32.gmra.mxu1 %v1037_v30  ;;  %v3130_v53 = vmul.f32 %v1037_v30, %v689_v33  ;;  %v3395_v30 = vld [vmem:[#allocation4_spill] sm:$0xff] }
 0x268   :  { %v2033_v54 = vpop.eup %2032  ;;  %2040 = vrcp.f32 %v919_v21  ;;  %v663_v8 = vmax.f32 %v3395_v30, 0.0  ;;  %v3396_v21 = vld [vmem:[#allocation5_spill] sm:$0xff] }
 0x269   :  { %v1039_v3 = vmul.f32 %v2033_v54, %v2958_v18  ;;  %v692_v18 = vmax.f32 %v2748_v24, 0.0  ;;  %v664_v54 = vmax.f32 %v3396_v21, 0.0 }
 0x26a   :  { %v921_v28 = vpop.xlane.xlu1 %920  ;;  %v923_v27 = vpop.xlane.xlu0 %922 }
 0x26b   :  { %2042 = vrcp.f32 %v921_v28  ;;  %1801 = vmatprep.mubr.f32.mxu1 %v1039_v3  ;;  %v3134_v55 = vmul.f32 %v1039_v3, %v690_v45  ;;  %v3397_v3 = vld [vmem:[#allocation6_spill] sm:$0xff] }
 0x26c   :  { %v2035_v19 = vpop.eup %2034  ;;  %2044 = vrcp.f32 %v923_v27  ;;  %v665_v28 = vmax.f32 %v3397_v3, 0.0 }
 0x26d   :  { %v1041_v17 = vmul.f32 %v2035_v19, %v2963_v12  ;;  %v3394_v12 = vld [vmem:[#allocation3_spill] sm:$0xff] }
 0x26e   :  { %v925_v39 = vpop.xlane.xlu1 %924  ;;  %v662_v16 = vmax.f32 %v3394_v12, 0.0 }
 0x26f   :  { %2046 = vrcp.f32 %v925_v39  ;;  %1802 = vmatmul.mubr.f32.gmra.mxu1 %v1041_v17  ;;  %v1075_v41 = vmul.f32 %v1041_v17, %v691_v51 }
 0x270   :  { %v2037_v48 = vpop.eup %2036 }
 0x271   :  { %v1043_v52 = vmul.f32 %v2037_v48, %v2967_v62 }
 0x273   :  { %1804 = vmatprep.mubr.f32.mxu1 %v1043_v52  ;;  %v1076_v10 = vmul.f32 %v1043_v52, %v692_v18 }
 0x274   :  { %v2039_v46 = vpop.eup %2038 }
 0x275   :  { %v2041_v58 = vpop.eup %2040  ;;  %v1045_v50 = vmul.f32 %v2039_v46, %v2972_v4 }
 0x276   :  { %v983_v0 = vmul.f32 %v2041_v58, %v2974_v29 }
 0x277   :  { %1805 = vmatmul.mubr.f32.gmra.mxu1 %v1045_v50  ;;  %v1077_v13 = vmul.f32 %v1045_v50, %v693_v25 }
 0x278   :  { %v2043_v31 = vpop.eup %2042  ;;  %1759 = vmatprep.mubr.f32.mxu0 %v983_v0  ;;  %v1046_v24 = vmul.f32 %v983_v0, %v662_v16 }
 0x279   :  { %v2045_v33 = vpop.eup %2044  ;;  %v985_v62 = vmul.f32 %v2043_v31, %v2980_v15 }
 0x27a   :  { %1839 = vmatprep.mubr.f32.mxu1 %v1046_v24  ;;  %v987_v2 = vmul.f32 %v2045_v33, %v2982_v23 }
 0x27b   :  { %1760 = vmatmul.mubr.f32.vlgmr.msra.gmra.mxu0 %v985_v62  ;;  %v1047_v4 = vmul.f32 %v985_v62, %v663_v8 }
 0x27c   :  { %v2047_v45 = vpop.eup %2046  ;;  %1762 = vmatprep.mubr.f32.mxu0 %v987_v2  ;;  %v1048_v29 = vmul.f32 %v987_v2, %v664_v54 }
 0x27d   :  { %1840 = vmatmul.mubr.f32.vlgmr.msra.gmra.mxu1 %v1047_v4  ;;  %v989_v27 = vmul.f32 %v2047_v45, %v2987_v61 }
 0x27e   :  { %1842 = vmatprep.mubr.f32.mxu1 %v1048_v29 }
 0x27f   :  { %1763 = vmatmul.mubr.f32.gmra.mxu0 %v989_v27  ;;  %v1049_v19 = vmul.f32 %v989_v27, %v665_v28 }
 0x281   :  { %1843 = vmatmul.mubr.f32.gmra.mxu1 %v1049_v19 }
 0x282   :  { %1845 = vmatprep.mubr.f32.mxu1 %v2992_v56 }
 0x285   :  { %1846 = vmatmul.mubr.f32.gmra.mxu1 %v2999_v7 }
 0x286   :  { %1848 = vmatprep.mubr.f32.mxu1 %v3010_v49 }
 0x289   :  { %1849 = vmatmul.mubr.f32.gmra.mxu1 %v3020_v57 }
 0x28a   :  { %1851 = vmatprep.mubr.f32.mxu1 %v3030_v36 }
 0x28d   :  { %1852 = vmatmul.mubr.f32.gmra.mxu1 %v3040_v44 }
 0x28e   :  { %1854 = vmatprep.mubr.f32.mxu1 %v3050_v38 }
 0x291   :  { %1855 = vmatmul.mubr.f32.gmra.mxu1 %v3060_v20 }
 0x292   :  { %1857 = vmatprep.mubr.f32.mxu1 %v3070_v14 }
 0x295   :  { %1858 = vmatmul.mubr.f32.gmra.mxu1 %v3074_v43 }
 0x296   :  { %1860 = vmatprep.mubr.f32.mxu1 %v3078_v1 }
 0x299   :  { %1861 = vmatmul.mubr.f32.gmra.mxu1 %v3082_v63 }
 0x29a   :  { %1863 = vmatprep.mubr.f32.mxu1 %v3086_v22 }
 0x29d   :  { %1864 = vmatmul.mubr.f32.gmra.mxu1 %v3090_v47 }
 0x29e   :  { %1866 = vmatprep.mubr.f32.mxu1 %v3094_v26 }
 0x2a1   :  { %1867 = vmatmul.mubr.f32.gmra.mxu1 %v3098_v32 }
 0x2a2   :  { %1869 = vmatprep.mubr.f32.mxu1 %v3102_v59 }
 0x2a5   :  { %1870 = vmatmul.mubr.f32.gmra.mxu1 %v3106_v5 }
 0x2a6   :  { %1872 = vmatprep.mubr.f32.mxu1 %v3110_v6 }
 0x2a9   :  { %1873 = vmatmul.mubr.f32.gmra.mxu1 %v3114_v40 }
 0x2aa   :  { %1875 = vmatprep.mubr.f32.mxu1 %v3118_v42 }
 0x2ad   :  { %1876 = vmatmul.mubr.f32.gmra.mxu1 %v3122_v60 }
 0x2ae   :  { %1878 = vmatprep.mubr.f32.mxu1 %v3126_v37 }
 0x2b1   :  { %1879 = vmatmul.mubr.f32.gmra.mxu1 %v3130_v53 }
 0x2b2   :  { %1881 = vmatprep.mubr.f32.mxu1 %v3134_v55 }
 0x2b5   :  { %1882 = vmatmul.mubr.f32.gmra.mxu1 %v1075_v41 }
 0x2b6   :  { %1884 = vmatprep.mubr.f32.mxu1 %v1076_v10 }
 0x2b9   :  { %1885 = vmatmul.mubr.f32.gmra.mxu1 %v1077_v13 }
 0x2cf   :  { %v1767_v15 = vpop.f32.mrf.mxu1 }
 0x2d1   :  { %v1196_v23 = vpop.f32.mrf.mxu1 }
 0x2d7   :  { %v1770_v61 = vpop.f32.mrf.mxu1 }
 0x2d9   :  { %v1206_v56 = vpop.f32.mrf.mxu1 }
 0x2df   :  { %v1773_v7 = vpop.f32.mrf.mxu1 }
 0x2e1   :  { %v1216_v49 = vpop.f32.mrf.mxu1 }
 0x2e7   :  { %v1776_v57 = vpop.f32.mrf.mxu1 }
 0x2e9   :  { %v1226_v36 = vpop.f32.mrf.mxu1 }
 0x2ef   :  { %v3175_v44 = vpop.f32.mrf.mxu1 }
 0x2f1   :  { %v3177_v38 = vpop.f32.mrf.mxu1 }
 0x2f7   :  { %v3179_v20 = vpop.f32.mrf.mxu1 }
 0x2f9   :  { %v3181_v14 = vpop.f32.mrf.mxu1 }
 0x2ff   :  { %v3183_v43 = vpop.f32.mrf.mxu1 }
 0x301   :  { %v3185_v1 = vpop.f32.mrf.mxu1 }
 0x307   :  { %v3187_v63 = vpop.f32.mrf.mxu1 }
 0x309   :  { %v3189_v22 = vpop.f32.mrf.mxu1 }
 0x30f   :  { %v3191_v47 = vpop.f32.mrf.mxu1 }
 0x311   :  { %v3193_v26 = vpop.f32.mrf.mxu1 }
 0x317   :  { %v3195_v32 = vpop.f32.mrf.mxu1 }
 0x319   :  { %v3197_v59 = vpop.f32.mrf.mxu1 }
 0x31f   :  { %v3199_v5 = vpop.f32.mrf.mxu1 }
 0x321   :  { %v3201_v6 = vpop.f32.mrf.mxu1 }
 0x327   :  { %v3203_v40 = vpop.f32.mrf.mxu1 }
 0x329   :  { %v3205_v42 = vpop.f32.mrf.mxu1 }
 0x32f   :  { %v3207_v60 = vpop.f32.mrf.mxu1 }
 0x331   :  { %v3209_v37 = vpop.f32.mrf.mxu1 }
 0x337   :  { %v3211_v53 = vpop.f32.mrf.mxu1 }
 0x339   :  { %v3213_v55 = vpop.f32.mrf.mxu1 }
 0x33b   :  { %v1761_v35 = vpop.f32.mrf.mxu0 }
 0x33d   :  { %v1176_v51 = vpop.f32.mrf.mxu0  ;;  %v1841_v17 = vpop.f32.mrf.mxu1 }
 0x33e   :  { %v1407_v9 = vadd.f32 %v1841_v17, %v1761_v35 }
 0x33f   :  { %v1764_v39 = vpop.f32.mrf.mxu0  ;;  %v1401_v41 = vpop.f32.mrf.mxu1 }
 0x340   :  { %1562 = vst.msk [vmem:[%s3368_s5 + $0x8] sm:$0xff] %vm1560_vm3, %v1407_v9  ;;  %v1402_v48 = vadd.f32 %v1401_v41, %v1176_v51 }
 0x341   :  { %v1844_v18 = vpop.f32.mrf.mxu1  ;;  %v1186_v34 = vpop.f32.mrf.mxu0 }
 0x342   :  { %1561 = vst.msk [vmem:[%s3368_s5] sm:$0xff] %vm1560_vm3, %v1402_v48  ;;  %v1417_v11 = vadd.f32 %v1844_v18, %v1764_v39 }
 0x343   :  { %v1411_v52 = vpop.f32.mrf.mxu1 }
 0x344   :  { %1564 = vst.msk [vmem:[%s3368_s5 + $0x18] sm:$0xff] %vm1560_vm3, %v1417_v11  ;;  %v1412_v10 = vadd.f32 %v1411_v52, %v1186_v34 }
 0x345   :  { %v1847_v46 = vpop.f32.mrf.mxu1 }
 0x346   :  { %1563 = vst.msk [vmem:[%s3368_s5 + $0x10] sm:$0xff] %vm1560_vm3, %v1412_v10  ;;  %v1427_v58 = vadd.f32 %v1847_v46, %v1767_v15 }
 0x347   :  { %v1421_v25 = vpop.f32.mrf.mxu1 }
 0x348   :  { %1566 = vst.msk [vmem:[%s3368_s5 + $0x28] sm:$0xff] %vm1560_vm3, %v1427_v58  ;;  %v1422_v50 = vadd.f32 %v1421_v25, %v1196_v23 }
 0x349   :  { %v1850_v12 = vpop.f32.mrf.mxu1 }
 0x34a   :  { %1565 = vst.msk [vmem:[%s3368_s5 + $0x20] sm:$0xff] %vm1560_vm3, %v1422_v50  ;;  %v1437_v16 = vadd.f32 %v1850_v12, %v1770_v61 }
 0x34b   :  { %v1431_v0 = vpop.f32.mrf.mxu1 }
 0x34c   :  { %1568 = vst.msk [vmem:[%s3368_s5 + $0x38] sm:$0xff] %vm1560_vm3, %v1437_v16  ;;  %v1432_v13 = vadd.f32 %v1431_v0, %v1206_v56 }
 0x34d   :  { %v1853_v31 = vpop.f32.mrf.mxu1 }
 0x34e   :  { %1567 = vst.msk [vmem:[%s3368_s5 + $0x30] sm:$0xff] %vm1560_vm3, %v1432_v13  ;;  %v1447_v24 = vadd.f32 %v1853_v31, %v1773_v7 }
 0x34f   :  { %v1441_v33 = vpop.f32.mrf.mxu1 }
 0x350   :  { %1570 = vst.msk [vmem:[%s3368_s5 + $0x48] sm:$0xff] %vm1560_vm3, %v1447_v24  ;;  %v1442_v30 = vadd.f32 %v1441_v33, %v1216_v49 }
 0x351   :  { %v1856_v8 = vpop.f32.mrf.mxu1 }
 0x352   :  { %1569 = vst.msk [vmem:[%s3368_s5 + $0x40] sm:$0xff] %vm1560_vm3, %v1442_v30  ;;  %v1457_v62 = vadd.f32 %v1856_v8, %v1776_v57 }
 0x353   :  { %v1451_v21 = vpop.f32.mrf.mxu1 }
 0x354   :  { %1572 = vst.msk [vmem:[%s3368_s5 + $0x58] sm:$0xff] %vm1560_vm3, %v1457_v62  ;;  %v1452_v54 = vadd.f32 %v1451_v21, %v1226_v36 }
 0x355   :  { %v1859_v2 = vpop.f32.mrf.mxu1 }
 0x356   :  { %1571 = vst.msk [vmem:[%s3368_s5 + $0x50] sm:$0xff] %vm1560_vm3, %v1452_v54  ;;  %v1467_v4 = vadd.f32 %v1859_v2, %v3175_v44 }
 0x357   :  { %v1461_v45 = vpop.f32.mrf.mxu1 }
 0x358   :  { %1574 = vst.msk [vmem:[%s3368_s5 + $0x68] sm:$0xff] %vm1560_vm3, %v1467_v4  ;;  %v1462_v29 = vadd.f32 %v1461_v45, %v3177_v38 }
 0x359   :  { %v1862_v3 = vpop.f32.mrf.mxu1 }
 0x35a   :  { %1573 = vst.msk [vmem:[%s3368_s5 + $0x60] sm:$0xff] %vm1560_vm3, %v1462_v29  ;;  %v1477_v28 = vadd.f32 %v1862_v3, %v3179_v20 }
 0x35b   :  { %v1471_v27 = vpop.f32.mrf.mxu1 }
 0x35c   :  { %1576 = vst.msk [vmem:[%s3368_s5 + $0x78] sm:$0xff] %vm1560_vm3, %v1477_v28  ;;  %v1472_v19 = vadd.f32 %v1471_v27, %v3181_v14 }
 0x35d   :  { %v1865_v15 = vpop.f32.mrf.mxu1 }
 0x35e   :  { %1575 = vst.msk [vmem:[%s3368_s5 + $0x70] sm:$0xff] %vm1560_vm3, %v1472_v19  ;;  %v1487_v23 = vadd.f32 %v1865_v15, %v3183_v43 }
 0x35f   :  { %v1481_v61 = vpop.f32.mrf.mxu1 }
 0x360   :  { %1578 = vst.msk [vmem:[%s3368_s5 + $0x88] sm:$0xff] %vm1560_vm3, %v1487_v23  ;;  %v1482_v56 = vadd.f32 %v1481_v61, %v3185_v1 }
 0x361   :  { %v1868_v7 = vpop.f32.mrf.mxu1 }
 0x362   :  { %1577 = vst.msk [vmem:[%s3368_s5 + $0x80] sm:$0xff] %vm1560_vm3, %v1482_v56  ;;  %v1497_v49 = vadd.f32 %v1868_v7, %v3187_v63 }
 0x363   :  { %v1491_v57 = vpop.f32.mrf.mxu1 }
 0x364   :  { %1580 = vst.msk [vmem:[%s3368_s5 + $0x98] sm:$0xff] %vm1560_vm3, %v1497_v49  ;;  %v1492_v36 = vadd.f32 %v1491_v57, %v3189_v22 }
 0x365   :  { %v1871_v44 = vpop.f32.mrf.mxu1 }
 0x366   :  { %1579 = vst.msk [vmem:[%s3368_s5 + $0x90] sm:$0xff] %vm1560_vm3, %v1492_v36  ;;  %v1507_v38 = vadd.f32 %v1871_v44, %v3191_v47 }
 0x367   :  { %v1501_v20 = vpop.f32.mrf.mxu1 }
 0x368   :  { %1582 = vst.msk [vmem:[%s3368_s5 + $0xa8] sm:$0xff] %vm1560_vm3, %v1507_v38  ;;  %v1502_v14 = vadd.f32 %v1501_v20, %v3193_v26 }
 0x369   :  { %v1874_v43 = vpop.f32.mrf.mxu1 }
 0x36a   :  { %1581 = vst.msk [vmem:[%s3368_s5 + $0xa0] sm:$0xff] %vm1560_vm3, %v1502_v14  ;;  %v1517_v1 = vadd.f32 %v1874_v43, %v3195_v32 }
 0x36b   :  { %v1511_v63 = vpop.f32.mrf.mxu1 }
 0x36c   :  { %1584 = vst.msk [vmem:[%s3368_s5 + $0xb8] sm:$0xff] %vm1560_vm3, %v1517_v1  ;;  %v1512_v22 = vadd.f32 %v1511_v63, %v3197_v59 }
 0x36d   :  { %v1877_v47 = vpop.f32.mrf.mxu1 }
 0x36e   :  { %1583 = vst.msk [vmem:[%s3368_s5 + $0xb0] sm:$0xff] %vm1560_vm3, %v1512_v22  ;;  %v1527_v26 = vadd.f32 %v1877_v47, %v3199_v5 }
 0x36f   :  { %v1521_v35 = vpop.f32.mrf.mxu1 }
 0x370   :  { %1586 = vst.msk [vmem:[%s3368_s5 + $0xc8] sm:$0xff] %vm1560_vm3, %v1527_v26  ;;  %v1522_v32 = vadd.f32 %v1521_v35, %v3201_v6 }
 0x371   :  { %v1880_v51 = vpop.f32.mrf.mxu1 }
 0x372   :  { %1585 = vst.msk [vmem:[%s3368_s5 + $0xc0] sm:$0xff] %vm1560_vm3, %v1522_v32  ;;  %v1537_v59 = vadd.f32 %v1880_v51, %v3203_v40 }
 0x373   :  { %v1531_v17 = vpop.f32.mrf.mxu1 }
 0x374   :  { %1588 = vst.msk [vmem:[%s3368_s5 + $0xd8] sm:$0xff] %vm1560_vm3, %v1537_v59  ;;  %v1532_v5 = vadd.f32 %v1531_v17, %v3205_v42 }
 0x375   :  { %v1883_v9 = vpop.f32.mrf.mxu1 }
 0x376   :  { %1587 = vst.msk [vmem:[%s3368_s5 + $0xd0] sm:$0xff] %vm1560_vm3, %v1532_v5  ;;  %v1547_v6 = vadd.f32 %v1883_v9, %v3207_v60 }
 0x377   :  { %v1541_v39 = vpop.f32.mrf.mxu1 }
 0x378   :  { %1590 = vst.msk [vmem:[%s3368_s5 + $0xe8] sm:$0xff] %vm1560_vm3, %v1547_v6  ;;  %v1542_v40 = vadd.f32 %v1541_v39, %v3209_v37 }
 0x379   :  { %v1886_v41 = vpop.f32.mrf.mxu1 }
 0x37a   :  { %1589 = vst.msk [vmem:[%s3368_s5 + $0xe0] sm:$0xff] %vm1560_vm3, %v1542_v40  ;;  %v1557_v42 = vadd.f32 %v1886_v41, %v3211_v53 }
 0x37b   :  { %v1551_v48 = vpop.f32.mrf.mxu1 }
 0x37c   :  { %1592 = vst.msk [vmem:[%s3368_s5 + $0xf8] sm:$0xff] %vm1560_vm3, %v1557_v42  ;;  %v1552_v60 = vadd.f32 %v1551_v48, %v3213_v55 }
 0x37e   :  { %1591 = vst.msk [vmem:[%s3368_s5 + $0xf0] sm:$0xff] %vm1560_vm3, %v1552_v60 }

</bundles_post_ra>
